<compile_context>
chip_gen: v7x
topology: tpu7x:2x2x1
jax: 0.10.0
libtpu: 0.0.40
codegen_flags: <defaults>
</compile_context>

<pallas_src>
import jax
import jax.numpy as jnp
from jax.experimental import pallas as pl
from jax.experimental.pallas import tpu as pltpu


# ----------------------------------------------------------------------------
# Kernel
# ----------------------------------------------------------------------------
def nnlm_kernel(ids_ref, m01_ref, b1_ref, w2_ref, b2_ref, o_ref):
    # ids_ref: [TB, 2]    int32 context token ids (batch tile)
    # m01_ref: [2V, Hp]   bf16  vstack(Emb@W1a, Emb@W1b), H zero-padded to Hp
    # b1_ref:  [1, Hp]    f32
    # w2_ref:  [Hp, V]    bf16  output-layer weight
    # b2_ref:  [1, V]     f32
    # o_ref:   [TB, V]    f32   log-probabilities
    ids = ids_ref[...]                                   # [TB, 2] int32
    tb = ids.shape[0]
    two_v = m01_ref.shape[0]
    v = two_v // 2

    # Single one-hot over the concatenated [2V] axis, built directly in bf16.
    # Column j is hot iff (j == ids0) or (j == ids1 + V); the two hot columns
    # land in disjoint halves, so oh @ vstack(M0, M1) == M0[ids0] + M1[ids1].
    col = jax.lax.broadcasted_iota(jnp.int32, (tb, two_v), 1)
    oh = ((col == ids[:, 0:1]) | (col == ids[:, 1:2] + v)).astype(jnp.bfloat16)

    # Hidden layer (single MXU launch, K = 2V) + bias, then tanh in f32 (EUP).
    h_pre = jnp.dot(oh, m01_ref[...], preferred_element_type=jnp.float32) + b1_ref[...]
    h = jnp.tanh(h_pre)                                  # f32, [TB, Hp]

    # Output layer.
    logits = (
        jnp.dot(h.astype(jnp.bfloat16), w2_ref[...],
                preferred_element_type=jnp.float32)
        + b2_ref[...]
    )                                                    # f32, [TB, V]

    # Numerically stable log_softmax along the vocab axis (all f32).
    m = jnp.max(logits, axis=-1, keepdims=True)
    shifted = logits - m
    lse = jnp.log(jnp.sum(jnp.exp(shifted), axis=-1, keepdims=True))
    o_ref[...] = shifted - lse


# ----------------------------------------------------------------------------
# One-time parameter preparation (hoisted off the per-call hot path)
# ----------------------------------------------------------------------------
def prepare_nnlm_params(emb_table, w1, b1, w2, b2):
    """Fold Emb into W1 (in f32), pad to lane-dense shapes, cast matmul
    operands to bf16.  Call once; reuse the result for every forward call."""
    V, E = emb_table.shape
    H = w1.shape[1]
    assert w1.shape[0] == 2 * E and w2.shape == (H, V)

    LANE = 128
    Hp = pl.cdiv(H, LANE) * LANE
    assert V % LANE == 0, "vocab must be lane-dense here"
    # TODO(synk): if V is ever not a multiple of 128, pad it and mask the
    #             padded vocab columns to -inf before the log_softmax reduce.

    emb_f32 = emb_table.astype(jnp.float32)
    w1_f32 = w1.astype(jnp.float32)
    m0 = emb_f32 @ w1_f32[:E, :]                          # [V, H] f32
    m1 = emb_f32 @ w1_f32[E:, :]                          # [V, H] f32
    m01 = jnp.concatenate([m0, m1], axis=0)               # [2V, H] f32
    m01_p = jnp.pad(m01, ((0, 0), (0, Hp - H))).astype(jnp.bfloat16)   # [2V, Hp]
    b1_p = jnp.pad(b1.astype(jnp.float32), ((0, 0), (0, Hp - H)))      # [1, Hp]
    w2_p = jnp.pad(w2, ((0, Hp - H), (0, 0))).astype(jnp.bfloat16)     # [Hp, V]
    b2_p = b2.astype(jnp.float32)                                      # [1, V]
    return m01_p, b1_p, w2_p, b2_p


def _pick_batch_tile(B):
    """Largest tile in {1024, 512, 256} that still yields >= 2 batch tiles
    (keeps both TensorCores busy on v7x); fall back to 128 for small B."""
    for tb in (1024, 512, 256):
        if pl.cdiv(B, tb) >= 2:
            return tb
    return 128


# ----------------------------------------------------------------------------
# Forward
# ----------------------------------------------------------------------------
def nnlm_forward_prepared(token_ids, params, *, batch_tile=None):
    """token_ids: [B, 2] int32; params from prepare_nnlm_params.
    Returns [B, V] float32 log-probs."""
    m01_p, b1_p, w2_p, b2_p = params
    two_v, Hp = m01_p.shape
    V = two_v // 2
    B = token_ids.shape[0]

    TB = batch_tile if batch_tile is not None else _pick_batch_tile(B)
    Bp = pl.cdiv(B, TB) * TB
    ids_p = jnp.pad(token_ids.astype(jnp.int32), ((0, Bp - B), (0, 0)))  # [Bp, 2]

    grid = (Bp // TB,)
    out = pl.pallas_call(
        nnlm_kernel,
        out_shape=jax.ShapeDtypeStruct((Bp, V), jnp.float32),
        grid_spec=pl.GridSpec(
            grid=grid,
            in_specs=[
                pl.BlockSpec((TB, 2), lambda i: (i, 0)),       # token ids (batch tile)
                # Weight blocks are grid-invariant (constant index_map); the
                # default pipelining is fine — VMEM is not a constraint here.
                pl.BlockSpec((two_v, Hp), lambda i: (0, 0)),   # folded Emb@W1
                pl.BlockSpec((1, Hp), lambda i: (0, 0)),       # b1
                pl.BlockSpec((Hp, V), lambda i: (0, 0)),       # W2
                pl.BlockSpec((1, V), lambda i: (0, 0)),        # b2
            ],
            out_specs=pl.BlockSpec((TB, V), lambda i: (i, 0)),
        ),
        compiler_params=pltpu.CompilerParams(
            dimension_semantics=("parallel",),   # batch tiles -> both TCs on v7x
        ),
    )(ids_p, m01_p, b1_p, w2_p, b2_p)
    return out[:B]


def nnlm_forward(token_ids, emb_table, w1, b1, w2, b2, *, batch_tile=None):
    """Convenience one-shot wrapper (prep + forward).  For repeated calls,
    call prepare_nnlm_params once and reuse nnlm_forward_prepared."""
    params = prepare_nnlm_params(emb_table, w1, b1, w2, b2)
    return nnlm_forward_prepared(token_ids, params, batch_tile=batch_tile)


# ----------------------------------------------------------------------------
# References
# ----------------------------------------------------------------------------
def reference_forward_f32(token_ids, emb_table, w1, b1, w2, b2):
    """Pure-f32 reference matching the PyTorch module semantics."""
    B = token_ids.shape[0]
    E = emb_table.shape[1]
    x = jnp.take(emb_table, token_ids, axis=0).reshape(B, 2 * E)
    h = jnp.tanh(x @ w1 + b1)
    logits = h @ w2 + b2
    return jax.nn.log_softmax(logits, axis=1)


def reference_forward_prepared(token_ids, params):
    """Reference using the SAME folded/padded/bf16 params as the kernel, so the
    only differences are XLA-vs-Pallas rounding of identical math."""
    m01_p, b1_p, w2_p, b2_p = params
    two_v = m01_p.shape[0]
    V = two_v // 2
    m01_f32 = m01_p.astype(jnp.float32)
    # One-hot @ bf16 table with f32 accumulate == gather of bf16 rows + f32 add.
    h_pre = m01_f32[token_ids[:, 0]] + m01_f32[V + token_ids[:, 1]] + b1_p
    h = jnp.tanh(h_pre)
    logits = (
        jnp.dot(h.astype(jnp.bfloat16), w2_p, preferred_element_type=jnp.float32)
        + b2_p
    )
    return jax.nn.log_softmax(logits, axis=1)


if __name__ == "__main__":
    # Small synthetic shapes consistent with the module:
    #   vocab_size=256, embedding_dim=32, hidden_dim=100 (module default),
    #   context of 2 tokens.  Batch 200 -> TB=128 -> 2 batch tiles.
    B = 200
    V = 256
    E = 32
    H = 100

    key = jax.random.PRNGKey(0)
    k_emb, k_w1, k_b1, k_w2, k_b2, k_ids = jax.random.split(key, 6)

    emb_table = jax.random.normal(k_emb, (V, E), dtype=jnp.float32) * 0.1
    w1 = jax.random.normal(k_w1, (2 * E, H), dtype=jnp.float32) * 0.1
    b1 = jax.random.normal(k_b1, (1, H), dtype=jnp.float32) * 0.1
    w2 = jax.random.normal(k_w2, (H, V), dtype=jnp.float32) * 0.1
    b2 = jax.random.normal(k_b2, (1, V), dtype=jnp.float32) * 0.1

    token_ids = jax.random.randint(k_ids, (B, 2), 0, V, dtype=jnp.int32)

    # Prep once (hoisted off the hot path), then run the kernel.
    params = jax.tree_util.tree_map(
        jax.block_until_ready, prepare_nnlm_params(emb_table, w1, b1, w2, b2)
    )
    out = jax.block_until_ready(nnlm_forward_prepared(token_ids, params))
    assert out.shape == (B, V)
    assert out.dtype == jnp.float32

    # Tight check vs. a reference using the identical folded bf16 params.
    ref_bf16 = reference_forward_prepared(token_ids, params)
    assert jnp.allclose(out, ref_bf16, atol=1e-4, rtol=1e-4)

    # Loose semantic check vs. the pure-f32 unfolded reference
    # (bf16 operand rounding + fold reassociation).
    ref_f32 = reference_forward_f32(token_ids, emb_table, w1, b1, w2, b2)
    assert jnp.allclose(out, ref_f32, atol=5e-2, rtol=0.0)

    # log_softmax rows should sum to ~1 in prob space.
    assert jnp.allclose(jnp.sum(jnp.exp(out), axis=1), 1.0, atol=1e-4)

    print("KERNEL_OK")
</pallas_src>

<mosaic_0001>
module attributes {stable_mosaic.version = 11 : i64} {
  func.func @nnlm_kernel(%arg0: i32, %arg1: memref<128x2xi32, #tpu.memory_space<vmem>>, %arg2: memref<512x128xbf16, #tpu.memory_space<vmem>>, %arg3: memref<1x128xf32, #tpu.memory_space<vmem>>, %arg4: memref<128x256xbf16, #tpu.memory_space<vmem>>, %arg5: memref<1x256xf32, #tpu.memory_space<vmem>>, %arg6: memref<128x256xf32, #tpu.memory_space<vmem>>) attributes {dimension_semantics = [#tpu.dimension_semantics<parallel>], iteration_bounds = array<i64: 2>, scalar_prefetch = 0 : i64, scratch_operands = 0 : i64, tpu.core_type = #tpu.core_type<tc>, window_params = [{transform_indices = @transform_0, window_bounds = array<i64: 128, 2>}, {pipeline_mode = #tpu.pipeline_mode<synchronous>, transform_indices = @transform_1, window_bounds = array<i64: 512, 128>}, {pipeline_mode = #tpu.pipeline_mode<synchronous>, transform_indices = @transform_2, window_bounds = array<i64: 1, 128>}, {pipeline_mode = #tpu.pipeline_mode<synchronous>, transform_indices = @transform_3, window_bounds = array<i64: 128, 256>}, {pipeline_mode = #tpu.pipeline_mode<synchronous>, transform_indices = @transform_4, window_bounds = array<i64: 1, 256>}, {transform_indices = @transform_5, window_bounds = array<i64: 128, 256>}]} {
    %c0 = arith.constant 0 : index
    %c0_0 = arith.constant 0 : index
    %0 = vector.load %arg1[%c0, %c0_0] : memref<128x2xi32, #tpu.memory_space<vmem>>, vector<128x2xi32>
    %1 = tpu.iota {dimensions = array<i32: 1>} : vector<128x512xi32>
    %2 = vector.extract_strided_slice %0 {offsets = [0, 0], sizes = [128, 1], strides = [1, 1]} : vector<128x2xi32> to vector<128x1xi32>
    %3 = vector.broadcast %2 : vector<128x1xi32> to vector<128x512xi32>
    %4 = arith.cmpi eq, %1, %3 : vector<128x512xi32>
    %5 = vector.extract_strided_slice %0 {offsets = [0, 1], sizes = [128, 1], strides = [1, 1]} : vector<128x2xi32> to vector<128x1xi32>
    %c256_i32 = arith.constant 256 : i32
    %6 = vector.broadcast %c256_i32 : i32 to vector<128x1xi32>
    %7 = arith.addi %5, %6 : vector<128x1xi32>
    %8 = vector.broadcast %7 : vector<128x1xi32> to vector<128x512xi32>
    %9 = arith.cmpi eq, %1, %8 : vector<128x512xi32>
    %10 = arith.ori %4, %9 : vector<128x512xi1>
    %11 = arith.extui %10 : vector<128x512xi1> to vector<128x512xi32>
    %12 = arith.sitofp %11 : vector<128x512xi32> to vector<128x512xf32>
    %13 = arith.truncf %12 : vector<128x512xf32> to vector<128x512xbf16>
    %c0_1 = arith.constant 0 : index
    %c0_2 = arith.constant 0 : index
    %14 = vector.load %arg2[%c0_1, %c0_2] : memref<512x128xbf16, #tpu.memory_space<vmem>>, vector<512x128xbf16>
    %cst = arith.constant dense<0.000000e+00> : vector<128x128xf32>
    %15 = tpu.matmul %13, %14, %cst {dimension_numbers = #tpu.dot_dimension_numbers<[1], [0], [0], [1], [0, 0, 1, 1], [], []>} : vector<128x512xbf16>, vector<512x128xbf16>, vector<128x128xf32> -> vector<128x128xf32>
    %c0_3 = arith.constant 0 : index
    %c0_4 = arith.constant 0 : index
    %16 = vector.load %arg3[%c0_3, %c0_4] : memref<1x128xf32, #tpu.memory_space<vmem>>, vector<1x128xf32>
    %17 = vector.broadcast %16 : vector<1x128xf32> to vector<128x128xf32>
    %18 = arith.addf %15, %17 : vector<128x128xf32>
    %19 = math.tanh %18 : vector<128x128xf32>
    %20 = arith.truncf %19 : vector<128x128xf32> to vector<128x128xbf16>
    %c0_5 = arith.constant 0 : index
    %c0_6 = arith.constant 0 : index
    %21 = vector.load %arg4[%c0_5, %c0_6] : memref<128x256xbf16, #tpu.memory_space<vmem>>, vector<128x256xbf16>
    %cst_7 = arith.constant dense<0.000000e+00> : vector<128x256xf32>
    %22 = tpu.matmul %20, %21, %cst_7 {dimension_numbers = #tpu.dot_dimension_numbers<[1], [0], [0], [1], [0, 0, 1, 1], [], []>} : vector<128x128xbf16>, vector<128x256xbf16>, vector<128x256xf32> -> vector<128x256xf32>
    %c0_8 = arith.constant 0 : index
    %c0_9 = arith.constant 0 : index
    %23 = vector.load %arg5[%c0_8, %c0_9] : memref<1x256xf32, #tpu.memory_space<vmem>>, vector<1x256xf32>
    %24 = vector.broadcast %23 : vector<1x256xf32> to vector<128x256xf32>
    %25 = arith.addf %22, %24 : vector<128x256xf32>
    %cst_10 = arith.constant dense<0xFF800000> : vector<128xf32>
    %26 = vector.multi_reduction <maximumf>, %25, %cst_10 [1] : vector<128x256xf32> to vector<128xf32>
    %27 = vector.shape_cast %26 : vector<128xf32> to vector<128x1xf32>
    %28 = vector.broadcast %27 : vector<128x1xf32> to vector<128x256xf32>
    %29 = arith.subf %25, %28 : vector<128x256xf32>
    %30 = math.exp %29 : vector<128x256xf32>
    %cst_11 = arith.constant dense<0.000000e+00> : vector<128xf32>
    %31 = vector.multi_reduction <add>, %30, %cst_11 [1] : vector<128x256xf32> to vector<128xf32>
    %32 = vector.shape_cast %31 : vector<128xf32> to vector<128x1xf32>
    %33 = math.log %32 : vector<128x1xf32>
    %34 = vector.broadcast %33 : vector<128x1xf32> to vector<128x256xf32>
    %35 = arith.subf %29, %34 : vector<128x256xf32>
    %c0_12 = arith.constant 0 : index
    %c0_13 = arith.constant 0 : index
    %36 = vector.load %arg6[%c0_12, %c0_13] : memref<128x256xf32, #tpu.memory_space<vmem>>, vector<128x256xf32>
    tpu.vector_store %arg6[%c0_12, %c0_13], %35 {strides = array<i32>} : memref<128x256xf32, #tpu.memory_space<vmem>>, vector<128x256xf32>,
    return
  }
  func.func @transform_0(%arg0: i32) -> (i32, i32) {
    %c0_i32 = arith.constant 0 : i32
    %c0_i32_0 = arith.constant 0 : i32
    return %arg0, %c0_i32 : i32, i32
  }
  func.func @transform_1(%arg0: i32) -> (i32, i32) {
    %c0_i32 = arith.constant 0 : i32
    %c0_i32_0 = arith.constant 0 : i32
    %c0_i32_1 = arith.constant 0 : i32
    return %c0_i32, %c0_i32_0 : i32, i32
  }
  func.func @transform_2(%arg0: i32) -> (i32, i32) {
    %c0_i32 = arith.constant 0 : i32
    %c0_i32_0 = arith.constant 0 : i32
    %c0_i32_1 = arith.constant 0 : i32
    return %c0_i32, %c0_i32_0 : i32, i32
  }
  func.func @transform_3(%arg0: i32) -> (i32, i32) {
    %c0_i32 = arith.constant 0 : i32
    %c0_i32_0 = arith.constant 0 : i32
    %c0_i32_1 = arith.constant 0 : i32
    return %c0_i32, %c0_i32_0 : i32, i32
  }
  func.func @transform_4(%arg0: i32) -> (i32, i32) {
    %c0_i32 = arith.constant 0 : i32
    %c0_i32_0 = arith.constant 0 : i32
    %c0_i32_1 = arith.constant 0 : i32
    return %c0_i32, %c0_i32_0 : i32, i32
  }
  func.func @transform_5(%arg0: i32) -> (i32, i32) {
    %c0_i32 = arith.constant 0 : i32
    %c0_i32_0 = arith.constant 0 : i32
    return %arg0, %c0_i32 : i32, i32
  }
}

</mosaic_0001>

<bundles_post_ra>
// kernel: tpu_custom_call.1
= control target key start
LH: loop header
LB: loop body
LE: loop exit
PB: predicated region body
PF: predicated region fallthrough
CT: control target
= control target key end

     0   :  { %10 = vsyncpa [#allocation3], 0  ;;  %s3706_s0 = inlined_call_operand.vmem [shape: s32[256,2], index: 0, kind: input, shape index: {}]   ;;  %s3707_s1 = inlined_call_operand.vmem [shape: bf16[512,128], index: 1, kind: input, shape index: {}]   ;;  %s3708_s2 = inlined_call_operand.vmem [shape: f32[1,128], index: 2, kind: input, shape index: {}]   ;;  %s3709_s3 = inlined_call_operand.hbm [shape: bf16[128,256], index: 3, kind: input, shape index: {}]   ;;  %s3710_s4 = inlined_call_operand.vmem [shape: f32[1,256], index: 4, kind: input, shape index: {}]   ;;  %s3711_s5 = inlined_call_operand.hbm [shape: f32[256,256], index: 5, kind: output, shape index: {}]  }
   0x1   :  { %11 = vsyncpa [#allocation4], 0 }
   0x2   :  { %13 = vsyncpa [#allocation4 + $0x1], 0  ;;  %s2540_s18 = smov 0   ;;  %s2542_s19 = smov 0  }
   0x3   :  { %s2544_s20 = smov 0   ;;  %s2546_s21 = smov 0  }
   0x4 LB: > { %s2561_s22 = sadd.s32 4294967295, %s2499_s21   ;;  %s1806_s23 = sadd.s32 4294967294, %s2499_s21   ;;  %s2499_s21 = sphi %s2546_s21, %s3840_s21   ;;  %s2495_s20 = sphi %s2544_s20, %s3839_s20   ;;  %s2491_s19 = sphi %s2542_s19, %s3838_s19   ;;  %s2487_s18 = sphi %s2540_s18, %s3837_s18  }
   0x5   : > { %s2565_s24 = sadd.s32 1, %s2499_s21   ;;  %s136_s25 = sadd.s32 1, %s2495_s20 }
   0x6   : > { %s133_s26 = ssub.s32 %s2499_s21, %s2565_s24  ;;  %p146_p0 = scmp.ne.s32.totalorder %s2495_s20, %s2491_s19 }
   0x7   : > { %p134_p1 = scmp.eq.s32.totalorder %s133_s26, 0  ;;  %p147_p2 = scmp.eq.s32.totalorder %s2561_s22, 1 }
   0x8   : > { %p152_p3 = scmp.ne.s32.totalorder %s2491_s19, %s2487_s18  ;;  %p153_p4 = scmp.eq.s32.totalorder %s1806_s23, 1 }
   0x9   : > { %s2576_s27 = scalar_select %p134_p1, %s2495_s20, %s136_s25  }
   0xa   : > { %p2578_p5 = por %p147_p2, %p146_p0  ;;  %p2582_p6 = por %p153_p4, %p152_p3 }
   0xb   : > { %p1807_p7 = scmp.ge.s32.totalorder %s2499_s21, 1  ;;  %p160_p8 = scmp.lt.s32.totalorder %s2499_s21, 3 }
   0xc   : > { %s3727_s28 = scalar_select %p2578_p5, 1, 0 }
   0xd   : > { %s3728_s29 = scalar_select %p2582_p6, 1, 0 }
   0xe   : > { %p3712_p9 = scmp.eq.s32.totalorder %s2561_s22, 0  ;;  %p2589_p10 = pnand %p1807_p7, %p160_p8 }
   0xf   : > { %s2501_s6 = smov [#allocation2]   ;;  %s2405_s11 = scalar_lea.hbm %s3709_s3, 2048 }
  0x10   : > { %s3729_s30 = scalar_select %p2589_p10, 1, 0 }
  0x11   : > { %s178_s7 = sshll.u32 %s2501_s6, 4  ;;  %p2150_p11 = pneg %p2589_p10  ;;  %s179_s7 = int_to_ptr.vmem [resolvable:$true] %s178_s7 }
  0x12   : > { %p2406_p13 = scmp.ne.s32.totalorder %s3709_s3, %s2405_s11  ;;  %p2412_p3 = scmp.lt.u32.totalorder %s2405_s11, %s3709_s3 }
  0x13   : > { %p2597_p12 = pnand %p3712_p9, %p2150_p11 }
  0x15   : > { %p2407_p0 = pneg %p2597_p12 }
  0x17   : > { %p2408_p1 = pnand %p2407_p0, %p2406_p13 }
  0x19   : > { %p2409_p2 = pneg %p2408_p1 }
  0x1b   : > { %p2414_p4 = pnand %p2412_p3, %p2409_p2 }
  0x1d   : > { %2417 = shalt.err (!%p2414_p4)
}
  0x1e   : > { %s2418_s16 = scalar_lea.vmem %s179_s7, 2048  ;;  %p2426_p9 = scmp.lt.s32.totalorder %s179_s7, %s179_s7 }
  0x1f   : > { %p2419_p7 = scmp.ne.s32.totalorder %s179_s7, %s2418_s16  ;;  %p2427_p6 = scmp.lt.s32.totalorder %s2418_s16, %s2418_s16 }
  0x21   : > { %p2421_p8 = pnand %p2419_p7, %p2407_p0  ;;  %p2428_p5 = por %p2427_p6, %p2426_p9 }
  0x23   : > { %p2422_p11 = pneg %p2421_p8 }
  0x25   : > { %p2429_p10 = pnand %p2428_p5, %p2422_p11 }
  0x27   : > { %2432 = shalt.err (!%p2429_p10)
}
  0x28   : > { %s2502_s17 = smov 128   ;;  %s2503_s23 = smov 8  }
  0x29   : > { %2153 = dma.hbm_to_vmem [thread:$0]  (!%p2597_p12), %s3709_s3, 2048, %s179_s7, [#allocation3], %s2502_s17, %s2502_s17, %s2503_s23  }
  0x2a   : > { %p3731_p13 = scmp.ne.s32.totalorder %s3729_s30, 0 }
  0x2b   : > { %p3732_p1 = scmp.eq.s32.totalorder (!%p3731_p13), %s2561_s22, 0 }
  0x2c   : > { %206 = sbr.rel (%p3731_p13) target bundleno = 1100 (0x44c), region = 40 }
  0x33   : > { %2478 = dma.done.wait (%p3732_p1), [#allocation3], 2048   ;;  %p3733_p0 = pmov %p3732_p1 }
  0x34   : > { %s1813_s6 = sshll.u32 %s2561_s22, 4  ;;  %v2504_v0 = vmov 0   ;;  %v2505_v5 = vmov 1   ;;  %v2221_v8 = vld [vmem:[%s3707_s1 + $0x40] sm:$0xff]   ;;  %v2223_v10 = vld [vmem:[%s3707_s1 + $0x48] sm:$0xff]   ;;  %v2225_v15 = vld [vmem:[%s3707_s1 + $0x50] sm:$0xff]   ;;  %v258_v51 = vlaneseq }
  0x35   : > { %2480 = vsyncadd (%p3733_p0), [#allocation3], 4294965248  ;;  %2202 = vset.pattern.permute.xlu1 %v2504_v0  ;;  %2201 = vset.pattern.permute.xlu0 %v2504_v0  ;;  %p235_p5 = scmp.lt.s32.totalorder %s1813_s6, 31  ;;  %v2222_v9 = vld [vmem:[%s3707_s1] sm:$0xff]   ;;  %v2224_v12 = vld [vmem:[%s3707_s1 + $0x8] sm:$0xff]   ;;  %s231_s15 = sand.u32 1, %s2491_s19  }
  0x36   : > { %2128 = vmatprep.subr.bf16.mxu1 %v2221_v8  ;;  %2000 = vmatprep.subr.bf16.mxu0 %v2221_v8  ;;  %v2226_v16 = vld [vmem:[%s3707_s1 + $0x10] sm:$0xff]   ;;  %v2227_v18 = vld [vmem:[%s3707_s1 + $0x58] sm:$0xff]   ;;  %v2229_v21 = vld [vmem:[%s3707_s1 + $0x60] sm:$0xff]   ;;  %v2717_v52 = vand.u32 127, %v258_v51  ;;  %s1812_s16 = sshll.u32 %s231_s15, 8  ;;  %s1999_s23 = sshll.u32 %s2561_s22, 12 }
  0x37   : > { %s3842_s6 = smov (!%p235_p5, %s1813_s6), 31  ;;  %2136 = vmatpush3.bf16.msra.mxu1 %v2222_v9  ;;  %2001 = vmatpush3.bf16.msra.mxu0 %v2222_v9  ;;  %v2228_v20 = vld [vmem:[%s3707_s1 + $0x18] sm:$0xff]   ;;  %v2230_v24 = vld [vmem:[%s3707_s1 + $0x20] sm:$0xff]   ;;  %v2231_v25 = vld [vmem:[%s3707_s1 + $0x68] sm:$0xff]   ;;  %s3590_s17 = scalar_lea.vmem [#allocation5], %s1812_s16 }
  0x38   : > { %s1814_s8 = sshll.u32 %s3842_s6, 3  ;;  %2129 = vmatprep.subr.bf16.mxu1 %v2223_v10  ;;  %2002 = vmatprep.subr.bf16.mxu0 %v2223_v10  ;;  %v2232_v28 = vld [vmem:[%s3707_s1 + $0x28] sm:$0xff]   ;;  %v2233_v29 = vld [vmem:[%s3707_s1 + $0x70] sm:$0xff]   ;;  %v2235_v34 = vld [vmem:[%s3707_s1 + $0x78] sm:$0xff]   ;;  %v2722_v55 = vadd.s32 128, %v2717_v52  ;;  %v2728_v57 = vadd.s32 384, %v2717_v52 }
  0x39   : > { %s2629_s30 = scalar_lea.vmem %s3706_s0, %s1814_s8  ;;  %v2234_v32 = vld [vmem:[%s3707_s1 + $0x30] sm:$0xff]   ;;  %v2236_v35 = vld [vmem:[%s3707_s1 + $0x38] sm:$0xff]   ;;  %v2237_v37 = vld [vmem:[%s3707_s1 + $0xc0] sm:$0xff]   ;;  %v2732_v59 = vadd.s32 256, %v2717_v52  ;;  %s1732_s25 = sshll.u32 %s3590_s17, 4  ;;  %s3655_s25 = int_to_ptr.vmem [resolvable:$true] %s1732_s25 }
  0x3a   : > { %v253_v1 = vld [vmem:[%s2629_s30 + $0x58] sm:$0xff]  ;;  %v250_v2 = vld [vmem:[%s2629_s30 + $0x40] sm:$0xff]  ;;  %v251_v4 = vld [vmem:[%s2629_s30 + $0x48] sm:$0xff]  ;;  %s3653_s8 = scalar_lea.hbm %s3711_s5, %s1999_s23  ;;  %s3665_s22 = scalar_lea.sflag [#allocation4], %s231_s15 }
  0x3b   : > { %297 = vperm.xlu1 %2202, %v253_v1   ;;  %288 = vperm.xlu0 %2201, %v250_v2   ;;  %v383_v3 = vadd.s32 256, %v250_v2  ;;  %v252_v6 = vld [vmem:[%s2629_s30 + $0x50] sm:$0xff]  ;;  %v384_v7 = vadd.s32 256, %v251_v4  ;;  %v386_v11 = vadd.s32 256, %v253_v1  ;;  %v254_v19 = vld [vmem:[%s2629_s30 + $0x60] sm:$0xff]  ;;  %v255_v22 = vld [vmem:[%s2629_s30 + $0x68] sm:$0xff] }
  0x3c   : > { %v385_v13 = vadd.s32 256, %v252_v6  ;;  %v256_v14 = vld [vmem:[%s2629_s30 + $0x70] sm:$0xff]  ;;  %2137 = vmatpush3.bf16.msra.mxu1 %v2224_v12  ;;  %2003 = vmatpush3.bf16.msra.mxu0 %v2224_v12  ;;  %v387_v23 = vadd.s32 256, %v254_v19  ;;  %v388_v26 = vadd.s32 256, %v255_v22  ;;  %v243_v30 = vld [vmem:[%s2629_s30 + $0x8] sm:$0xff]  ;;  %v257_v33 = vld [vmem:[%s2629_s30 + $0x78] sm:$0xff] }
  0x3d   : > { %v389_v17 = vadd.s32 256, %v256_v14  ;;  %2130 = vmatprep.subr.bf16.mxu1 %v2225_v15  ;;  %2004 = vmatprep.subr.bf16.mxu0 %v2225_v15  ;;  %v244_v27 = vld [vmem:[%s2629_s30 + $0x10] sm:$0xff]  ;;  %v390_v36 = vadd.s32 256, %v257_v33  ;;  %v242_v38 = vld [vmem:[%s2629_s30] sm:$0xff]  ;;  %v247_v39 = vld [vmem:[%s2629_s30 + $0x28] sm:$0xff]  ;;  %v376_v42 = vadd.s32 256, %v243_v30 }
  0x3e   : > { %v377_v31 = vadd.s32 256, %v244_v27  ;;  %v375_v40 = vadd.s32 256, %v242_v38  ;;  %v248_v41 = vld [vmem:[%s2629_s30 + $0x30] sm:$0xff]  ;;  %v245_v44 = vld [vmem:[%s2629_s30 + $0x18] sm:$0xff]  ;;  %v246_v46 = vld [vmem:[%s2629_s30 + $0x20] sm:$0xff]  ;;  %v380_v48 = vadd.s32 256, %v247_v39 }
  0x3f   : > { %2203 = vset.pattern.permute.xlu1 %v2505_v5  ;;  %291 = vperm.xlu0 %2201, %v251_v4   ;;  %v381_v43 = vadd.s32 256, %v248_v41  ;;  %v378_v45 = vadd.s32 256, %v245_v44  ;;  %v379_v47 = vadd.s32 256, %v246_v46  ;;  %v249_v49 = vld [vmem:[%s2629_s30 + $0x38] sm:$0xff]  ;;  %v3738_v1 = vmov 0  ;;  %v2240_v8 = vld [vmem:[%s3707_s1 + $0x88] sm:$0xff]  }
  0x40   : > { %416 = vperm.xlu1 %2203, %v383_v3   ;;  %2138 = vmatpush3.bf16.msra.mxu1 %v2226_v16  ;;  %v382_v50 = vadd.s32 256, %v249_v49  ;;  %v3740_v2 = vmov 0  ;;  %v2238_v3 = vld [vmem:[%s3707_s1 + $0x80] sm:$0xff]   ;;  %v2241_v10 = vld [vmem:[%s3707_s1 + $0xd0] sm:$0xff]   ;;  %s2433_s7 = scalar_lea.vmem %s3655_s25, 4096  ;;  %p3835_p9 = scmp.ne.s32.totalorder %s3727_s28, 0 }
  0x41   : > { %2131 = vmatprep.subr.bf16.mxu1 %v2227_v18  ;;  %2005 = vmatpush3.bf16.msra.mxu0 %v2226_v16  ;;  %v2242_v12 = vld [vmem:[%s3707_s1 + $0x90] sm:$0xff]   ;;  %p2434_p6 = scmp.ne.s32.totalorder %s3655_s25, %s2433_s7  ;;  %s2507_s9 = smov [#allocation5]  }
  0x42   : > { %2006 = vmatprep.subr.bf16.mxu0 %v2227_v18  ;;  %v2244_v18 = vld [vmem:[%s3707_s1 + $0x98] sm:$0xff]   ;;  %s2437_s10 = sshll.u32 %s2507_s9, 4  ;;  %s2438_s10 = int_to_ptr.vmem [resolvable:$false] %s2437_s10 }
  0x43   : > { %294 = vperm.xlu0 %2201, %v252_v6   ;;  %p2435_p10 = pnand %p2434_p6, %p3835_p9  ;;  %s2439_s11 = scalar_lea.vmem %s2438_s10, 8192 }
  0x44   : > { %419 = vperm.xlu1 %2203, %v384_v7   ;;  %2139 = vmatpush3.bf16.msra.mxu1 %v2228_v20  ;;  %v2239_v7 = vld [vmem:[%s3707_s1 + $0xc8] sm:$0xff]   ;;  %p2440_p2 = scmp.lt.s32.totalorder %s3655_s25, %s2438_s10  ;;  %p2441_p3 = scmp.lt.s32.totalorder %s2439_s11, %s2433_s7 }
  0x45   : > { %2132 = vmatprep.subr.bf16.mxu1 %v2229_v21  ;;  %2007 = vmatpush3.bf16.msra.mxu0 %v2228_v20  ;;  %p2436_p12 = pneg %p2435_p10 }
  0x46   : > { %2008 = vmatprep.subr.bf16.mxu0 %v2229_v21  ;;  %p2442_p4 = por %p2441_p3, %p2440_p2 }
  0x47   : > { %2204 = vset.pattern.permute.xlu0 %v2505_v5 }
  0x48   : > { %422 = vperm.xlu0 %2204, %v385_v13   ;;  %425 = vperm.xlu1 %2203, %v386_v11   ;;  %v2243_v13 = vld [vmem:[%s3707_s1 + $0xd8] sm:$0xff]   ;;  %p2443_p7 = pnand %p2442_p4, %p2436_p12 }
  0x49   : > { %2140 = vmatpush3.bf16.msra.mxu1 %v2230_v24  ;;  %2009 = vmatpush3.bf16.msra.mxu0 %v2230_v24 }
  0x4a   : > { %2133 = vmatprep.subr.bf16.mxu1 %v2231_v25  ;;  %2010 = vmatprep.subr.bf16.mxu0 %v2231_v25  ;;  %v2246_v25 = vld [vmem:[%s3707_s1 + $0xa0] sm:$0xff]  }
  0x4c   : > { %2205 = vset.pattern.permute.xlu1 %v2504_v0  ;;  %434 = vperm.xlu0 %2204, %v389_v17   ;;  %v3744_v17 = vmov 0 }
  0x4d   : > { %300 = vperm.xlu1 %2205, %v254_v19   ;;  %2141 = vmatpush3.bf16.msra.mxu1 %v2232_v28  ;;  %v2245_v19 = vld [vmem:[%s3707_s1 + $0xe0] sm:$0xff]  }
  0x4e   : > { %2134 = vmatprep.subr.bf16.mxu1 %v2233_v29  ;;  %2011 = vmatpush3.bf16.msra.mxu0 %v2232_v28 }
  0x4f   : > { %2012 = vmatprep.subr.bf16.mxu0 %v2233_v29  ;;  %v2248_v29 = vld [vmem:[%s3707_s1 + $0xa8] sm:$0xff]  }
  0x50   : > { %2208 = vset.pattern.permute.xlu0 %v2504_v0 }
  0x51   : > { %2206 = vset.pattern.permute.xlu1 %v2505_v5  ;;  %303 = vperm.xlu0 %2208, %v255_v22  }
  0x52   : > { %428 = vperm.xlu1 %2206, %v387_v23   ;;  %2142 = vmatpush3.bf16.msra.mxu1 %v2234_v32  ;;  %v3748_v23 = vmov 0 }
  0x53   : > { %2135 = vmatprep.subr.bf16.mxu1 %v2235_v34  ;;  %2013 = vmatpush3.bf16.msra.mxu0 %v2234_v32  ;;  %v3756_v32 = vmov 0 }
  0x54   : > { %2014 = vmatprep.subr.bf16.mxu0 %v2235_v34  ;;  %v3758_v34 = vmov 0 }
  0x55   : > { %306 = vperm.xlu0 %2208, %v256_v14   ;;  %v3742_v14 = vmov 0 }
  0x56   : > { %431 = vperm.xlu1 %2206, %v388_v26   ;;  %2143 = vmatpush3.bf16.msra.mxu1 %v2236_v35 }
  0x57   : > { %2064 = vmatprep.subr.bf16.mxu1 %v2237_v37  ;;  %2015 = vmatpush3.bf16.msra.mxu0 %v2236_v35  ;;  %v3760_v37 = vmov 0 }
  0x59   : > { %267 = vperm.xlu0 %2208, %v243_v30   ;;  %v2274_v30 = vld [vmem:[#allocation2 + $0x70] ss:$8 sps:$4 sm:$0xff]  }
  0x5a   : > { %2207 = vset.pattern.permute.xlu1 %v2504_v0 }
  0x5b   : > { %309 = vperm.xlu1 %2207, %v257_v33   ;;  %v2250_v33 = vld [vmem:[%s3707_s1 + $0xb0] sm:$0xff]  }
  0x5d   : > { %2213 = vset.pattern.permute.xlu0 %v2505_v5 }
  0x5e   : > { %398 = vperm.xlu0 %2213, %v377_v31   ;;  %v2249_v31 = vld [vmem:[%s3707_s1 + $0xf0] sm:$0xff]  }
  0x5f   : > { %2209 = vset.pattern.permute.xlu1 %v2505_v5 }
  0x60   : > { %437 = vperm.xlu1 %2209, %v390_v36   ;;  %v2251_v36 = vld [vmem:[%s3707_s1 + $0xf8] sm:$0xff]  }
  0x62   : > { %2214 = vset.pattern.permute.xlu0 %v2504_v0 }
  0x63   : > { %270 = vperm.xlu0 %2214, %v244_v27   ;;  %v2247_v27 = vld [vmem:[%s3707_s1 + $0xe8] sm:$0xff]  }
  0x64   : > { %2210 = vset.pattern.permute.xlu1 %v2504_v0 }
  0x65   : > { %264 = vperm.xlu1 %2210, %v242_v38  }
  0x67   : > { %279 = vperm.xlu0 %2214, %v247_v39   ;;  %v2252_v39 = vld [vmem:[%s3707_s1 + $0xb8] sm:$0xff]  }
  0x69   : > { %2211 = vset.pattern.permute.xlu1 %v2505_v5 }
  0x6a   : > { %392 = vperm.xlu1 %2211, %v375_v40  }
  0x6b   : > { %282 = vperm.xlu0 %2214, %v248_v41  }
  0x6e   : > { %395 = vperm.xlu1 %2211, %v376_v42  }
  0x6f   : > { %2219 = vset.pattern.permute.xlu0 %v2505_v5 }
  0x70   : > { %410 = vperm.xlu0 %2219, %v381_v43   ;;  %v3762_v43 = vmov 0 }
  0x72   : > { %2212 = vset.pattern.permute.xlu1 %v2504_v0 }
  0x73   : > { %273 = vperm.xlu1 %2212, %v245_v44   ;;  %v3764_v44 = vmov 0 }
  0x77   : > { %2215 = vset.pattern.permute.xlu1 %v2505_v5 }
  0x78   : > { %401 = vperm.xlu1 %2215, %v378_v45  }
  0x7c   : > { %2216 = vset.pattern.permute.xlu1 %v2504_v0 }
  0x7d   : > { %276 = vperm.xlu1 %2216, %v246_v46  }
  0x81   : > { %2217 = vset.pattern.permute.xlu1 %v2505_v5 }
  0x82   : > { %404 = vperm.xlu1 %2217, %v379_v47  }
  0x86   : > { %407 = vperm.xlu1 %2217, %v380_v48  }
  0x8a   : > { %2218 = vset.pattern.permute.xlu1 %v2504_v0 }
  0x8b   : > { %285 = vperm.xlu1 %2218, %v249_v49   ;;  %v3770_v49 = vmov 0 }
  0x8f   : > { %2220 = vset.pattern.permute.xlu1 %v2505_v5  ;;  %v2506_v5 = vmov 1.0|1.0  }
  0x90   : > { %413 = vperm.xlu1 %2220, %v382_v50   ;;  %v3772_v50 = vmov 0 }
  0xba   : > { %v2719_v53 = vpop.permute.xlu1 %297  ;;  %v289_v54 = vpop.permute.xlu0 %288 }
  0xbb   : > { %vm344_vm0 = vcmp.eq.s32.totalorder %v2722_v55, %v289_v54  ;;  %vm343_vm1 = vcmp.eq.s32.totalorder %v2717_v52, %v289_v54  ;;  %vm346_vm4 = vcmp.eq.s32.totalorder %v2728_v57, %v289_v54  ;;  %vm345_vm7 = vcmp.eq.s32.totalorder %v2732_v59, %v289_v54 }
  0xbc   : > { %v3776_v54 = vmov 0 }
  0xbe   : > { %v2724_v56 = vpop.permute.xlu0 %291 }
  0xbf   : > { %v417_v58 = vpop.permute.xlu1 %416  ;;  %vm348_vm9 = vcmp.eq.s32.totalorder %v2722_v55, %v2724_v56  ;;  %vm347_vm13 = vcmp.eq.s32.totalorder %v2717_v52, %v2724_v56 }
  0xc0   : > { %vm472_vm2 = vcmp.eq.s32.totalorder %v2722_v55, %v417_v58  ;;  %vm471_vm3 = vcmp.eq.s32.totalorder %v2717_v52, %v417_v58  ;;  %vm474_vm5 = vcmp.eq.s32.totalorder %v2728_v57, %v417_v58  ;;  %vm473_vm8 = vcmp.eq.s32.totalorder %v2732_v59, %v417_v58 }
  0xc1   : > { %vm2738_vm6 = vmor %vm344_vm0, %vm472_vm2 }
  0xc2   : > { %v2744_v61 = vpop.permute.xlu0 %294  ;;  %vm2748_vm10 = vmor %vm343_vm1, %vm471_vm3 }
  0xc3   : > { %v420_v63 = vpop.permute.xlu1 %419  ;;  %vm2752_vm11 = vmor %vm346_vm4, %vm474_vm5  ;;  %vm352_vm2 = vcmp.eq.s32.totalorder %v2722_v55, %v2744_v61 }
  0xc4   : > { %v3739_v1 = vsel %vm2752_vm11, 4294967295, %v3738_v1  ;;  %vm476_vm12 = vcmp.eq.s32.totalorder %v2722_v55, %v420_v63  ;;  %vm475_vm14 = vcmp.eq.s32.totalorder %v2717_v52, %v420_v63  ;;  %vm2760_vm15 = vmor %vm345_vm7, %vm473_vm8  ;;  %vm356_vm7 = vcmp.eq.s32.totalorder %v2722_v55, %v2719_v53 }
  0xc5   : > { %v3741_v2 = vsel %vm2760_vm15, 4294967295, %v3740_v2  ;;  %vm540_vm0 = vmor %vm348_vm9, %vm476_vm12  ;;  %vm351_vm9 = vcmp.eq.s32.totalorder %v2717_v52, %v2744_v61 }
  0xc6   : > { %vm1928_vm1 = vmpackc.low %vm540_vm0, %vm2738_vm6  ;;  %vm355_vm0 = vcmp.eq.s32.totalorder %v2717_v52, %v2719_v53 }
  0xc7   : > { %v2771_v4 = vpop.permute.xlu0 %422  ;;  %1929 = vmatprep.mubr.msk.bf16.mxu1 %vm1928_vm1, %v2506_v5  ;;  %v2774_v6 = vpop.permute.xlu1 %425  ;;  %vm539_vm3 = vmor %vm347_vm13, %vm475_vm14 }
  0xc8   : > { %vm1930_vm4 = vmpackc.low %vm539_vm3, %vm2748_vm10  ;;  %vm480_vm5 = vcmp.eq.s32.totalorder %v2722_v55, %v2771_v4  ;;  %vm484_vm6 = vcmp.eq.s32.totalorder %v2722_v55, %v2774_v6  ;;  %vm479_vm12 = vcmp.eq.s32.totalorder %v2717_v52, %v2771_v4  ;;  %vm483_vm10 = vcmp.eq.s32.totalorder %v2717_v52, %v2774_v6 }
  0xc9   : > { %1931 = vmatmul.mubr.msk.bf16.vlgmr.msra.gmra.mrb[0].mxu1 %vm1930_vm4, %v2506_v5  ;;  %vm544_vm8 = vmor %vm352_vm2, %vm480_vm5  ;;  %vm350_vm2 = vcmp.eq.s32.totalorder %v2728_v57, %v2724_v56  ;;  %vm478_vm3 = vcmp.eq.s32.totalorder %v2728_v57, %v420_v63 }
  0xca   : > { %vm548_vm13 = vmor %vm356_vm7, %vm484_vm6  ;;  %2065 = vmatpush3.bf16.msra.mxu1 %v2238_v3  ;;  %vm349_vm6 = vcmp.eq.s32.totalorder %v2732_v59, %v2724_v56  ;;  %vm477_vm7 = vcmp.eq.s32.totalorder %v2732_v59, %v420_v63  ;;  %v3778_v56 = vmov 0 }
  0xcb   : > { %vm1932_vm14 = vmpackc.low %vm548_vm13, %vm544_vm8  ;;  %v2797_v9 = vpop.permute.xlu0 %434  ;;  %2066 = vmatprep.subr.bf16.mxu1 %v2239_v7 }
  0xcc   : > { %1933 = vmatprep.mubr.msk.bf16.mxu1 %vm1932_vm14, %v2506_v5  ;;  %v2803_v11 = vpop.permute.xlu1 %300  ;;  %vm543_vm1 = vmor %vm351_vm9, %vm479_vm12  ;;  %vm354_vm14 = vcmp.eq.s32.totalorder %v2728_v57, %v2744_v61 }
  0xcd   : > { %vm547_vm4 = vmor %vm355_vm0, %vm483_vm10  ;;  %vm482_vm0 = vcmp.eq.s32.totalorder %v2728_v57, %v2771_v4 }
  0xce   : > { %vm1934_vm5 = vmpackc.low %vm547_vm4, %vm543_vm1  ;;  %2067 = vmatpush3.bf16.msra.mxu1 %v2240_v8  ;;  %vm360_vm1 = vcmp.eq.s32.totalorder %v2722_v55, %v2803_v11 }
  0xcf   : > { %2068 = vmatprep.subr.bf16.mxu1 %v2241_v10  ;;  %vm2819_vm8 = vmor %vm350_vm2, %vm478_vm3 }
  0xd0   : > { %v3743_v14 = vsel %vm2819_vm8, 4294967295, %v3742_v14  ;;  %v2823_v15 = vpop.permute.xlu0 %303  ;;  %vm2832_vm12 = vmor %vm349_vm6, %vm477_vm7  ;;  %vm359_vm6 = vcmp.eq.s32.totalorder %v2717_v52, %v2803_v11 }
  0xd1   : > { %1935 = vmatmul.mubr.msk.bf16.gmra.mrb[4].mxu1 %vm1934_vm5, %v2506_v5  ;;  %v2830_v16 = vpop.permute.xlu1 %428  ;;  %v3745_v17 = vsel %vm2832_vm12, 4294967295, %v3744_v17  ;;  %vm364_vm3 = vcmp.eq.s32.totalorder %v2722_v55, %v2823_v15  ;;  %vm496_vm5 = vcmp.eq.s32.totalorder %v2722_v55, %v2797_v9  ;;  %vm2872_vm10 = vmor %vm354_vm14, %vm482_vm0  ;;  %vm495_vm12 = vcmp.eq.s32.totalorder %v2717_v52, %v2797_v9 }
  0xd2   : > { %vm488_vm13 = vcmp.eq.s32.totalorder %v2722_v55, %v2830_v16  ;;  %2069 = vmatpush3.bf16.msra.mxu1 %v2242_v12  ;;  %vm487_vm2 = vcmp.eq.s32.totalorder %v2717_v52, %v2830_v16  ;;  %v3749_v23 = vsel %vm2872_vm10, 4294967295, %v3748_v23 }
  0xd3   : > { %2070 = vmatprep.subr.bf16.mxu1 %v2243_v13  ;;  %vm2858_vm4 = vmor %vm360_vm1, %vm488_vm13  ;;  %vm363_vm1 = vcmp.eq.s32.totalorder %v2717_v52, %v2823_v15  ;;  %v3793_v13 = vmov 0 }
  0xd4   : > { %v2862_v21 = vpop.permute.xlu0 %306  ;;  %vm2882_vm15 = vmor %vm359_vm6, %vm487_vm2 }
  0xd5   : > { %v2866_v22 = vpop.permute.xlu1 %431  ;;  %vm368_vm7 = vcmp.eq.s32.totalorder %v2722_v55, %v2862_v21  ;;  %vm367_vm6 = vcmp.eq.s32.totalorder %v2717_v52, %v2862_v21 }
  0xd6   : > { %vm492_vm13 = vcmp.eq.s32.totalorder %v2722_v55, %v2866_v22  ;;  %vm491_vm9 = vcmp.eq.s32.totalorder %v2717_v52, %v2866_v22  ;;  %2071 = vmatpush3.bf16.msra.mxu1 %v2244_v18  ;;  %vm2889_vm0 = vmor %vm368_vm7, %vm496_vm5  ;;  %vm486_vm5 = vcmp.eq.s32.totalorder %v2728_v57, %v2774_v6  ;;  %v3795_v18 = vmov 0 }
  0xd7   : > { %vm556_vm14 = vmor %vm364_vm3, %vm492_vm13  ;;  %2072 = vmatprep.subr.bf16.mxu1 %v2245_v19  ;;  %vm481_vm13 = vcmp.eq.s32.totalorder %v2732_v59, %v2771_v4  ;;  %v3797_v19 = vmov 0 }
  0xd8   : > { %vm1936_vm2 = vmpackc.low %vm556_vm14, %vm2858_vm4  ;;  %v268_v38 = vpop.permute.xlu0 %267 }
  0xd9   : > { %1937 = vmatprep.mubr.msk.bf16.mxu1 %vm1936_vm2, %v2506_v5  ;;  %vm555_vm3 = vmor %vm363_vm1, %vm491_vm9  ;;  %vm353_vm9 = vcmp.eq.s32.totalorder %v2732_v59, %v2744_v61  ;;  %vm357_vm2 = vcmp.eq.s32.totalorder %v2732_v59, %v2719_v53 }
  0xda   : > { %vm1938_vm7 = vmpackc.low %vm555_vm3, %vm2882_vm15  ;;  %v2907_v28 = vpop.permute.xlu1 %309  ;;  %2073 = vmatpush3.bf16.msra.mxu1 %v2246_v25  ;;  %vm358_vm15 = vcmp.eq.s32.totalorder %v2728_v57, %v2719_v53 }
  0xdb   : > { %1939 = vmatmul.mubr.msk.bf16.gmra.mrb[8].mxu1 %vm1938_vm7, %v2506_v5  ;;  %vm2913_vm4 = vmor %vm367_vm6, %vm495_vm12  ;;  %2074 = vmatprep.subr.bf16.mxu1 %v2247_v27  ;;  %vm485_vm12 = vcmp.eq.s32.totalorder %v2732_v59, %v2774_v6  ;;  %v3805_v27 = vmov 0 }
  0xdc   : > { %vm2926_vm1 = vmor %vm358_vm15, %vm486_vm5  ;;  %vm372_vm5 = vcmp.eq.s32.totalorder %v2722_v55, %v2907_v28 }
  0xdd   : > { %v3757_v32 = vsel %vm2926_vm1, 4294967295, %v3756_v32  ;;  %vm2941_vm6 = vmor %vm353_vm9, %vm481_vm13  ;;  %v399_v41 = vpop.permute.xlu0 %398 }
  0xde   : > { %2075 = vmatpush3.bf16.msra.mxu1 %v2248_v29  ;;  %v3759_v34 = vsel %vm2941_vm6, 4294967295, %v3758_v34  ;;  %vm2950_vm3 = vmor %vm357_vm2, %vm485_vm12  ;;  %vm371_vm2 = vcmp.eq.s32.totalorder %v2717_v52, %v2907_v28  ;;  %v2276_v29 = vld [vmem:[#allocation2 + $0x74] ss:$8 sps:$4 sm:$0xff]  }
  0xdf   : > { %v2945_v35 = vpop.permute.xlu1 %437  ;;  %2076 = vmatprep.subr.bf16.mxu1 %v2249_v31  ;;  %v3761_v37 = vsel %vm2950_vm3, 4294967295, %v3760_v37 }
  0xe0   : > { %vm500_vm7 = vcmp.eq.s32.totalorder %v2722_v55, %v2945_v35  ;;  %vm499_vm15 = vcmp.eq.s32.totalorder %v2717_v52, %v2945_v35 }
  0xe1   : > { %vm564_vm13 = vmor %vm372_vm5, %vm500_vm7  ;;  %vm366_vm5 = vcmp.eq.s32.totalorder %v2728_v57, %v2823_v15  ;;  %vm494_vm7 = vcmp.eq.s32.totalorder %v2728_v57, %v2866_v22 }
  0xe2   : > { %vm1940_vm12 = vmpackc.low %vm564_vm13, %vm2889_vm0  ;;  %2077 = vmatpush3.bf16.msra.mxu1 %v2250_v33  ;;  %vm490_vm0 = vcmp.eq.s32.totalorder %v2728_v57, %v2830_v16  ;;  %v271_v46 = vpop.permute.xlu0 %270 }
  0xe3   : > { %1941 = vmatprep.mubr.msk.bf16.mxu1 %vm1940_vm12, %v2506_v5  ;;  %vm563_vm14 = vmor %vm371_vm2, %vm499_vm15  ;;  %2078 = vmatprep.subr.bf16.mxu1 %v2251_v36  ;;  %vm362_vm15 = vcmp.eq.s32.totalorder %v2728_v57, %v2803_v11  ;;  %vm322_vm8 = vcmp.eq.s32.totalorder %v2728_v57, %v271_v46 }
  0xe4   : > { %vm1942_vm9 = vmpackc.low %vm563_vm14, %vm2913_vm4  ;;  %v265_v40 = vpop.permute.xlu1 %264 }
  0xe5   : > { %1943 = vmatmul.mubr.msk.bf16.gmra.mrb[12].mxu1 %vm1942_vm9, %v2506_v5  ;;  %vm2983_vm13 = vmor %vm362_vm15, %vm490_vm0  ;;  %vm313_vm4 = vcmp.eq.s32.totalorder %v2732_v59, %v265_v40  ;;  %vm312_vm0 = vcmp.eq.s32.totalorder %v2722_v55, %v265_v40  ;;  %vm314_vm10 = vcmp.eq.s32.totalorder %v2728_v57, %v265_v40  ;;  %vm311_vm1 = vcmp.eq.s32.totalorder %v2717_v52, %v265_v40 }
  0xe6   : > { %2079 = vmatpush3.bf16.msra.mxu1 %v2252_v39  ;;  %v3763_v43 = vsel %vm2983_vm13, 4294967295, %v3762_v43  ;;  %vm2991_vm2 = vmor %vm366_vm5, %vm494_vm7  ;;  %vm320_vm5 = vcmp.eq.s32.totalorder %v2722_v55, %v271_v46  ;;  %vm448_vm7 = vcmp.eq.s32.totalorder %v2722_v55, %v399_v41  ;;  %v3062_v60 = vpop.permute.xlu0 %279 }
  0xe7   : > { %v3765_v44 = vsel %vm2991_vm2, 4294967295, %v3764_v44  ;;  %vm450_vm2 = vcmp.eq.s32.totalorder %v2728_v57, %v399_v41 }
  0xe9   : > { %v393_v42 = vpop.permute.xlu1 %392 }
  0xea   : > { %vm441_vm14 = vcmp.eq.s32.totalorder %v2732_v59, %v393_v42  ;;  %vm440_vm9 = vcmp.eq.s32.totalorder %v2722_v55, %v393_v42  ;;  %vm442_vm12 = vcmp.eq.s32.totalorder %v2728_v57, %v393_v42  ;;  %vm439_vm15 = vcmp.eq.s32.totalorder %v2717_v52, %v393_v42  ;;  %v283_v4 = vpop.permute.xlu0 %282 }
  0xeb   : > { %vm2995_vm6 = vmor %vm313_vm4, %vm441_vm14  ;;  %vm317_vm4 = vcmp.eq.s32.totalorder %v2732_v59, %v268_v38 }
  0xec   : > { %vm3001_vm3 = vmor %vm312_vm0, %vm440_vm9 }
  0xed   : > { %v396_v48 = vpop.permute.xlu1 %395  ;;  %vm3009_vm14 = vmor %vm314_vm10, %vm442_vm12  ;;  %vm316_vm12 = vcmp.eq.s32.totalorder %v2722_v55, %v268_v38 }
  0xee   : > { %v3771_v49 = vsel %vm3009_vm14, 4294967295, %v3770_v49  ;;  %vm445_vm9 = vcmp.eq.s32.totalorder %v2732_v59, %v396_v48  ;;  %vm444_vm0 = vcmp.eq.s32.totalorder %v2722_v55, %v396_v48  ;;  %vm3016_vm11 = vmor %vm311_vm1, %vm439_vm15  ;;  %vm446_vm15 = vcmp.eq.s32.totalorder %v2728_v57, %v396_v48 }
  0xef   : > { %v3773_v50 = vsel %vm3016_vm11, 4294967295, %v3772_v50  ;;  %vm3022_vm13 = vmor %vm317_vm4, %vm445_vm9  ;;  %vm443_vm4 = vcmp.eq.s32.totalorder %v2717_v52, %v396_v48  ;;  %vm3780_vm1 = vnez %v3771_v49  ;;  %v411_v7 = vpop.permute.xlu0 %410 }
  0xf0   : > { %vm3026_vm10 = vmor %vm320_vm5, %vm448_vm7  ;;  %vm318_vm7 = vcmp.eq.s32.totalorder %v2728_v57, %v268_v38 }
  0xf1   : > { %v3777_v54 = vsel %vm3026_vm10, 4294967295, %v3776_v54  ;;  %vm508_vm11 = vmor %vm316_vm12, %vm444_vm0  ;;  %vm315_vm0 = vcmp.eq.s32.totalorder %v2717_v52, %v268_v38  ;;  %vm449_vm12 = vcmp.eq.s32.totalorder %v2732_v59, %v399_v41 }
  0xf2   : > { %vm3036_vm14 = vmor %vm322_vm8, %vm450_vm2  ;;  %v274_v58 = vpop.permute.xlu1 %273  ;;  %vm319_vm8 = vcmp.eq.s32.totalorder %v2717_v52, %v271_v46  ;;  %vm447_vm2 = vcmp.eq.s32.totalorder %v2717_v52, %v399_v41 }
  0xf3   : > { %v3779_v56 = vsel %vm3036_vm14, 4294967295, %v3778_v56  ;;  %vm1912_vm5 = vmpackc.low %vm508_vm11, %vm3001_vm3  ;;  %vm321_vm3 = vcmp.eq.s32.totalorder %v2732_v59, %v271_v46  ;;  %vm3781_vm14 = vnez %v3773_v50 }
  0xf4   : > { %1913 = vmatprep.mubr.msk.bf16.mxu0 %vm1912_vm5, %v2506_v5  ;;  %vm510_vm9 = vmor %vm318_vm7, %vm446_vm15  ;;  %vm324_vm15 = vcmp.eq.s32.totalorder %v2722_v55, %v274_v58 }
  0xf5   : > { %vm1944_vm10 = vmpackc.low %vm510_vm9, %vm3780_vm1 }
  0xf6   : > { %1945 = vmatprep.mubr.msk.bf16.mxu1 %vm1944_vm10, %v2506_v5  ;;  %vm507_vm11 = vmor %vm315_vm0, %vm443_vm4  ;;  %vm326_vm0 = vcmp.eq.s32.totalorder %v2728_v57, %v274_v58 }
  0xf7   : > { %vm1914_vm5 = vmpackc.low %vm507_vm11, %vm3781_vm14  ;;  %v402_v61 = vpop.permute.xlu1 %401  ;;  %vm3788_vm11 = vnez %v3779_v56  ;;  %v3284_v56 = vld [vmem:[%s3708_s2] ss:$0 sm:$0xff] }
  0xf8   : > { %vm3782_vm1 = vmpackc.low %vm3022_vm13, %vm2995_vm6  ;;  %1915 = vmatmul.mubr.msk.bf16.vlgmr.msra.gmra.mrb[0].mxu0 %vm1914_vm5, %v2506_v5  ;;  %vm452_vm14 = vcmp.eq.s32.totalorder %v2722_v55, %v402_v61  ;;  %vm454_vm7 = vcmp.eq.s32.totalorder %v2728_v57, %v402_v61  ;;  %vm3787_vm13 = vnez %v3777_v54 }
  0xf9   : > { %1947 = vmatmul.mubr.msk.bf16.vlgmr.msra.gmra.mrb[16].mxu1 %vm3782_vm1, %v2506_v5  ;;  %vm3064_vm10 = vmor %vm319_vm8, %vm447_vm2  ;;  %vm451_vm8 = vcmp.eq.s32.totalorder %v2717_v52, %v402_v61  ;;  %vm323_vm1 = vcmp.eq.s32.totalorder %v2717_v52, %v274_v58 }
  0xfa   : > { %vm3071_vm4 = vmor %vm321_vm3, %vm449_vm12  ;;  %vm453_vm3 = vcmp.eq.s32.totalorder %v2732_v59, %v402_v61 }
  0xfb   : > { %vm516_vm6 = vmor %vm324_vm15, %vm452_vm14  ;;  %vm325_vm14 = vcmp.eq.s32.totalorder %v2732_v59, %v274_v58 }
  0xfc   : > { %vm1916_vm9 = vmpackc.low %vm516_vm6, %vm3787_vm13  ;;  %v277_v3 = vpop.permute.xlu1 %276 }
  0xfd   : > { %1917 = vmatprep.mubr.msk.bf16.mxu0 %vm1916_vm9, %v2506_v5  ;;  %vm518_vm2 = vmor %vm326_vm0, %vm454_vm7  ;;  %vm328_vm13 = vcmp.eq.s32.totalorder %v2722_v55, %v277_v3 }
  0xfe   : > { %vm1948_vm5 = vmpackc.low %vm518_vm2, %vm3788_vm11  ;;  %vm330_vm2 = vcmp.eq.s32.totalorder %v2728_v57, %v277_v3 }
  0xff   : > { %1949 = vmatprep.mubr.msk.bf16.mxu1 %vm1948_vm5, %v2506_v5  ;;  %vm515_vm12 = vmor %vm323_vm1, %vm451_vm8  ;;  %vm327_vm5 = vcmp.eq.s32.totalorder %v2717_v52, %v277_v3  ;;  %vm332_vm1 = vcmp.eq.s32.totalorder %v2722_v55, %v3062_v60 }
 0x100   : > { %vm1918_vm15 = vmpackc.low %vm515_vm12, %vm3064_vm10  ;;  %vm329_vm12 = vcmp.eq.s32.totalorder %v2732_v59, %v277_v3 }
 0x101   : > { %1919 = vmatmul.mubr.msk.bf16.gmra.mrb[4].mxu0 %vm1918_vm15, %v2506_v5  ;;  %vm517_vm7 = vmor %vm325_vm14, %vm453_vm3  ;;  %v405_v6 = vpop.permute.xlu1 %404 }
 0x102   : > { %vm1950_vm6 = vmpackc.low %vm517_vm7, %vm3071_vm4  ;;  %vm456_vm9 = vcmp.eq.s32.totalorder %v2722_v55, %v405_v6  ;;  %vm458_vm0 = vcmp.eq.s32.totalorder %v2728_v57, %v405_v6  ;;  %vm455_vm8 = vcmp.eq.s32.totalorder %v2717_v52, %v405_v6  ;;  %vm457_vm4 = vcmp.eq.s32.totalorder %v2732_v59, %v405_v6 }
 0x103   : > { %1951 = vmatmul.mubr.msk.bf16.gmra.mrb[20].mxu1 %vm1950_vm6, %v2506_v5  ;;  %vm3096_vm10 = vmor %vm328_vm13, %vm456_vm9  ;;  %vm336_vm6 = vcmp.eq.s32.totalorder %v2722_v55, %v283_v4  ;;  %vm464_vm13 = vcmp.eq.s32.totalorder %v2722_v55, %v411_v7 }
 0x104   : > { %vm3102_vm11 = vmor %vm330_vm2, %vm458_vm0 }
 0x105   : > { %v408_v12 = vpop.permute.xlu1 %407  ;;  %vm3109_vm3 = vmor %vm327_vm5, %vm455_vm8  ;;  %vm334_vm8 = vcmp.eq.s32.totalorder %v2728_v57, %v3062_v60  ;;  %vm338_vm5 = vcmp.eq.s32.totalorder %v2728_v57, %v283_v4 }
 0x106   : > { %v3794_v13 = vsel %vm3109_vm3, 4294967295, %v3793_v13  ;;  %vm460_vm15 = vcmp.eq.s32.totalorder %v2722_v55, %v408_v12  ;;  %vm462_vm14 = vcmp.eq.s32.totalorder %v2728_v57, %v408_v12  ;;  %vm3116_vm7 = vmor %vm329_vm12, %vm457_vm4  ;;  %vm459_vm2 = vcmp.eq.s32.totalorder %v2717_v52, %v408_v12 }
 0x107   : > { %v3796_v18 = vsel %vm3116_vm7, 4294967295, %v3795_v18  ;;  %vm524_vm9 = vmor %vm332_vm1, %vm460_vm15  ;;  %vm466_vm4 = vcmp.eq.s32.totalorder %v2728_v57, %v411_v7  ;;  %vm461_vm15 = vcmp.eq.s32.totalorder %v2732_v59, %v408_v12  ;;  %vm463_vm3 = vcmp.eq.s32.totalorder %v2717_v52, %v411_v7 }
 0x108   : > { %vm1920_vm0 = vmpackc.low %vm524_vm9, %vm3096_vm10  ;;  %vm331_vm10 = vcmp.eq.s32.totalorder %v2717_v52, %v3062_v60  ;;  %vm335_vm9 = vcmp.eq.s32.totalorder %v2717_v52, %v283_v4 }
 0x109   : > { %1921 = vmatprep.mubr.msk.bf16.mxu0 %vm1920_vm0, %v2506_v5  ;;  %vm526_vm12 = vmor %vm334_vm8, %vm462_vm14  ;;  %vm333_vm0 = vcmp.eq.s32.totalorder %v2732_v59, %v3062_v60  ;;  %vm337_vm8 = vcmp.eq.s32.totalorder %v2732_v59, %v283_v4 }
 0x10a   : > { %vm3130_vm7 = vmor %vm336_vm6, %vm464_vm13  ;;  %v286_v20 = vpop.permute.xlu1 %285  ;;  %vm3801_vm13 = vnez %v3794_v13 }
 0x10b   : > { %v3798_v19 = vsel %vm3130_vm7, 4294967295, %v3797_v19  ;;  %vm1952_vm1 = vmpackc.low %vm526_vm12, %vm3102_vm11  ;;  %vm465_vm12 = vcmp.eq.s32.totalorder %v2732_v59, %v411_v7 }
 0x10c   : > { %1953 = vmatprep.mubr.msk.bf16.mxu1 %vm1952_vm1, %v2506_v5  ;;  %vm523_vm14 = vmor %vm331_vm10, %vm459_vm2  ;;  %vm489_vm2 = vcmp.eq.s32.totalorder %v2732_v59, %v2830_v16  ;;  %v3809_v16 = vmov 0 }
 0x10d   : > { %vm3142_vm6 = vmor %vm338_vm5, %vm466_vm4  ;;  %vm3804_vm5 = vnez %v3796_v18 }
 0x10e   : > { %vm1922_vm11 = vmpackc.low %vm523_vm14, %vm3801_vm13  ;;  %vm340_vm13 = vcmp.eq.s32.totalorder %v2722_v55, %v286_v20 }
 0x10f   : > { %1923 = vmatmul.mubr.msk.bf16.gmra.mrb[8].mxu0 %vm1922_vm11, %v2506_v5  ;;  %vm525_vm7 = vmor %vm333_vm0, %vm461_vm15  ;;  %v414_v26 = vpop.permute.xlu1 %413 }
 0x110   : > { %vm3153_vm1 = vmor %vm335_vm9, %vm463_vm3  ;;  %vm361_vm9 = vcmp.eq.s32.totalorder %v2732_v59, %v2803_v11  ;;  %vm468_vm11 = vcmp.eq.s32.totalorder %v2722_v55, %v414_v26  ;;  %vm467_vm15 = vcmp.eq.s32.totalorder %v2717_v52, %v414_v26  ;;  %v2259_v11 = vld [vmem:[#allocation2 + $0x20] ss:$8 sps:$4 sm:$0xff]  }
 0x111   : > { %vm1954_vm4 = vmpackc.low %vm525_vm7, %vm3804_vm5  ;;  %vm470_vm7 = vcmp.eq.s32.totalorder %v2728_v57, %v414_v26 }
 0x112   : > { %1955 = vmatmul.mubr.msk.bf16.gmra.mrb[24].mxu1 %vm1954_vm4, %v2506_v5  ;;  %vm3162_vm10 = vmor %vm337_vm8, %vm465_vm12  ;;  %vm3811_vm12 = vnez %v3798_v19  ;;  %vm342_vm4 = vcmp.eq.s32.totalorder %v2728_v57, %v286_v20 }
 0x113   : > { %v3806_v27 = vsel %vm3162_vm10, 4294967295, %v3805_v27  ;;  %vm3175_vm0 = vmor %vm361_vm9, %vm489_vm2  ;;  %vm339_vm10 = vcmp.eq.s32.totalorder %v2717_v52, %v286_v20  ;;  %vm469_vm2 = vcmp.eq.s32.totalorder %v2732_v59, %v414_v26  ;;  %v3813_v52 = vmov 0 }
 0x114   : > { %v3810_v16 = vsel %vm3175_vm0, 4294967295, %v3809_v16  ;;  %vm532_vm8 = vmor %vm340_vm13, %vm468_vm11  ;;  %vm341_vm11 = vcmp.eq.s32.totalorder %v2732_v59, %v286_v20 }
 0x115   : > { %vm1924_vm5 = vmpackc.low %vm532_vm8, %vm3811_vm12  ;;  %vm365_vm8 = vcmp.eq.s32.totalorder %v2732_v59, %v2823_v15  ;;  %v2264_v15 = vld [vmem:[#allocation2 + $0x34] ss:$8 sps:$4 sm:$0xff]  }
 0x116   : > { %1925 = vmatprep.mubr.msk.bf16.mxu0 %vm1924_vm5, %v2506_v5  ;;  %vm534_vm14 = vmor %vm342_vm4, %vm470_vm7  ;;  %vm493_vm7 = vcmp.eq.s32.totalorder %v2732_v59, %v2866_v22  ;;  %vm3815_vm5 = vnez %v3743_v14  ;;  %vm3816_vm4 = vnez %v3739_v1  ;;  %v2258_v1 = vld [vmem:[#allocation2 + $0x14] ss:$8 sps:$4 sm:$0xff]   ;;  %v2262_v14 = vld [vmem:[#allocation2 + $0x30] ss:$8 sps:$4 sm:$0xff]  }
 0x117   : > { %vm1956_vm3 = vmpackc.low %vm534_vm14, %vm3142_vm6  ;;  %vm3812_vm14 = vnez %v3806_v27  ;;  %v2268_v22 = vld [vmem:[#allocation2 + $0x50] ss:$8 sps:$4 sm:$0xff]  }
 0x118   : > { %1957 = vmatprep.mubr.msk.bf16.mxu1 %vm1956_vm3, %v2506_v5  ;;  %vm531_vm9 = vmor %vm339_vm10, %vm467_vm15  ;;  %vm370_vm10 = vcmp.eq.s32.totalorder %v2728_v57, %v2862_v21  ;;  %vm502_vm15 = vcmp.eq.s32.totalorder %v2728_v57, %v2945_v35 }
 0x119   : > { %vm1926_vm13 = vmpackc.low %vm531_vm9, %vm3153_vm1  ;;  %vm498_vm1 = vcmp.eq.s32.totalorder %v2728_v57, %v2797_v9  ;;  %vm3821_vm9 = vnez %v3741_v2  ;;  %v2256_v2 = vld [vmem:[#allocation2 + $0x10] ss:$8 sps:$4 sm:$0xff]  }
 0x11a   : > { %1927 = vmatmul.mubr.msk.bf16.gmra.mrb[12].mxu0 %vm1926_vm13, %v2506_v5  ;;  %vm533_vm6 = vmor %vm341_vm11, %vm469_vm2  ;;  %vm374_vm13 = vcmp.eq.s32.totalorder %v2728_v57, %v2907_v28  ;;  %v2253_v57 = vld [vmem:[#allocation2] ss:$8 sps:$4 sm:$0xff]  }
 0x11b   : > { %vm1958_vm12 = vmpackc.low %vm533_vm6, %vm3812_vm14  ;;  %1348 = vmatprep.mubr.bf16.mxu0 %v2504_v0  ;;  %vm501_vm14 = vcmp.eq.s32.totalorder %v2732_v59, %v2945_v35 }
 0x11c   : > { %1959 = vmatmul.mubr.msk.bf16.gmra.mrb[28].mxu1 %vm1958_vm12, %v2506_v5  ;;  %vm3205_vm3 = vmor %vm365_vm8, %vm493_vm7  ;;  %vm369_vm8 = vcmp.eq.s32.totalorder %v2732_v59, %v2862_v21  ;;  %vm497_vm7 = vcmp.eq.s32.totalorder %v2732_v59, %v2797_v9  ;;  %v2261_v9 = vld [vmem:[#allocation2 + $0x24] ss:$8 sps:$4 sm:$0xff]   ;;  %v2265_v21 = vld [vmem:[#allocation2 + $0x40] ss:$8 sps:$4 sm:$0xff]  }
 0x11d   : > { %v3814_v52 = vsel %vm3205_vm3, 4294967295, %v3813_v52  ;;  %vm3817_vm2 = vmpackc.low %vm3815_vm5, %vm3816_vm4  ;;  %vm373_vm5 = vcmp.eq.s32.totalorder %v2732_v59, %v2907_v28  ;;  %v2255_v59 = vld [vmem:[#allocation2 + $0x4] ss:$8 sps:$4 sm:$0xff]   ;;  %v2271_v28 = vld [vmem:[#allocation2 + $0x60] ss:$8 sps:$4 sm:$0xff]  }
 0x11e   : > { %1961 = vmatprep.mubr.msk.bf16.mxu1 %vm3817_vm2, %v2506_v5  ;;  %vm3223_vm11 = vmor %vm370_vm10, %vm498_vm1  ;;  %vm3820_vm2 = vnez %v3745_v17  ;;  %1316 = vmatprep.subr.bf16.mxu0 %v2255_v59  ;;  %v2267_v17 = vld [vmem:[#allocation2 + $0x44] ss:$8 sps:$4 sm:$0xff]  }
 0x11f   : > { %vm566_vm6 = vmor %vm374_vm13, %vm502_vm15  ;;  %vm3823_vm15 = vnez %v3757_v32  ;;  %vm3824_vm13 = vnez %v3749_v23  ;;  %1317 = vmatpush1.bf16.msra.mxu0 %v2253_v57  ;;  %v2273_v23 = vld [vmem:[#allocation2 + $0x64] ss:$8 sps:$4 sm:$0xff]  }
 0x120   : > { %vm1972_vm12 = vmpackc.low %vm566_vm6, %vm3223_vm11  ;;  %vm3826_vm11 = vnez %v3761_v37  ;;  %vm3829_vm6 = vnez %v3765_v44  ;;  %1318 = vmatprep.subr.bf16.mxu0 %v2258_v1 }
 0x121   : > { %vm561_vm10 = vmor %vm369_vm8, %vm497_vm7  ;;  %vm3827_vm8 = vnez %v3759_v34 }
 0x122   : > { %vm565_vm1 = vmor %vm373_vm5, %vm501_vm14  ;;  %vm3832_vm14 = vnez %v3814_v52  ;;  %vm3833_vm5 = vnez %v3810_v16 }
 0x123   : > { %vm1974_vm4 = vmpackc.low %vm565_vm1, %vm561_vm10  ;;  %1319 = vmatpush1.bf16.msra.mxu0 %v2256_v2 }
 0x124   : > { %vm3822_vm0 = vmpackc.low %vm3820_vm2, %vm3821_vm9  ;;  %vm3830_vm9 = vnez %v3763_v43  ;;  %1320 = vmatprep.subr.bf16.mxu0 %v2261_v9 }
 0x125   : > { %1963 = vmatmul.mubr.msk.bf16.gmra.mrb[32].mxu1 %vm3822_vm0, %v2506_v5  ;;  %vm3825_vm3 = vmpackc.low %vm3823_vm15, %vm3824_vm13 }
 0x126   : > { %1965 = vmatprep.mubr.msk.bf16.mxu1 %vm3825_vm3, %v2506_v5  ;;  %vm3828_vm7 = vmpackc.low %vm3826_vm11, %vm3827_vm8 }
 0x127   : > { %vm3831_vm0 = vmpackc.low %vm3829_vm6, %vm3830_vm9  ;;  %1321 = vmatpush1.bf16.msra.mxu0 %v2259_v11 }
 0x128   : > { %vm3834_vm3 = vmpackc.low %vm3832_vm14, %vm3833_vm5  ;;  %1322 = vmatprep.subr.bf16.mxu0 %v2264_v15 }
 0x12b   : > { %1323 = vmatpush1.bf16.msra.mxu0 %v2262_v14 }
 0x12c   : > { %1324 = vmatprep.subr.bf16.mxu0 %v2267_v17 }
 0x12d   : > { %1967 = vmatmul.mubr.msk.bf16.gmra.mrb[36].mxu1 %vm3828_vm7, %v2506_v5 }
 0x12e   : > { %1969 = vmatprep.mubr.msk.bf16.mxu1 %vm3831_vm0, %v2506_v5 }
 0x12f   : > { %1325 = vmatpush1.bf16.msra.mxu0 %v2265_v21 }
 0x135   : > { %1971 = vmatmul.mubr.msk.bf16.gmra.mrb[40].mxu1 %vm3834_vm3, %v2506_v5 }
 0x136   : > { %1973 = vmatprep.mubr.msk.bf16.mxu1 %vm1972_vm12, %v2506_v5 }
 0x13d   : > { %1975 = vmatmul.mubr.msk.bf16.gmra.mrb[44].mxu1 %vm1974_vm4, %v2506_v5  ;;  %v2270_v5 = vld [vmem:[#allocation2 + $0x54] ss:$8 sps:$4 sm:$0xff]  }
 0x13e   : > { %1326 = vmatprep.subr.bf16.mxu0 %v2270_v5 }
 0x13f   : > { %1327 = vmatpush1.bf16.msra.mxu0 %v2268_v22 }
 0x140   : > { %1328 = vmatprep.subr.bf16.mxu0 %v2273_v23 }
 0x143   : > { %1329 = vmatpush1.bf16.msra.mxu0 %v2271_v28 }
 0x144   : > { %1330 = vmatprep.subr.bf16.mxu0 %v2276_v29 }
 0x147   : > { %1331 = vmatpush1.bf16.msra.mxu0 %v2274_v30 }
 0x19c   : > { %v2040_v31 = vpop.f32.mrb[0].mxu1 }
 0x19d   : > { %v2041_v32 = vpop.f32.mrb[1].mxu1 }
 0x19e   : > { %v3269_v33 = vadd.f32 %v2041_v32, %v2040_v31  ;;  %v2043_v34 = vpop.f32.mrb[2].mxu1 }
 0x19f   : > { %v2044_v35 = vpop.f32.mrb[3].mxu1 }
 0x1a0   : > { %v3271_v36 = vadd.f32 %v2044_v35, %v2043_v34 }
 0x1a4   : > { %v2046_v37 = vpop.f32.mrb[4].mxu1 }
 0x1a5   : > { %v2047_v38 = vpop.f32.mrb[5].mxu1 }
 0x1a6   : > { %v3273_v39 = vadd.f32 %v2047_v38, %v2046_v37  ;;  %v2049_v40 = vpop.f32.mrb[6].mxu1 }
 0x1a7   : > { %v2050_v41 = vpop.f32.mrb[7].mxu1 }
 0x1a8   : > { %v3275_v42 = vadd.f32 %v2050_v41, %v2049_v40 }
 0x1ae   : > { %v2052_v43 = vpop.f32.mrb[8].mxu1 }
 0x1af   : > { %v2053_v44 = vpop.f32.mrb[9].mxu1 }
 0x1b0   : > { %v3277_v45 = vadd.f32 %v2053_v44, %v2052_v43  ;;  %v2055_v46 = vpop.f32.mrb[10].mxu1 }
 0x1b1   : > { %v2056_v47 = vpop.f32.mrb[11].mxu1 }
 0x1b2   : > { %v3279_v48 = vadd.f32 %v2056_v47, %v2055_v46 }
 0x1b8   : > { %v2058_v49 = vpop.f32.mrb[12].mxu1 }
 0x1b9   : > { %v2059_v50 = vpop.f32.mrb[13].mxu1 }
 0x1ba   : > { %v2060_v53 = vadd.f32 %v2059_v50, %v2058_v49  ;;  %v2061_v54 = vpop.f32.mrb[14].mxu1 }
 0x1bb   : > { %v2062_v58 = vpop.f32.mrb[15].mxu1 }
 0x1bc   : > { %v3287_v60 = vadd.f32 %v2060_v53, %v3284_v56  ;;  %v2063_v61 = vadd.f32 %v2062_v58, %v2061_v54 }
 0x1be   : > { %v3290_v62 = vadd.f32 %v2063_v61, %v3284_v56 }
 0x1cb   : > { %v2016_v3 = vpop.f32.mrb[0].mxu0 }
 0x1cc   : > { %v2080_v63 = vpop.f32.mrb[16].mxu1  ;;  %v2017_v6 = vpop.f32.mrb[1].mxu0 }
 0x1cd   : > { %v2081_v4 = vpop.f32.mrb[17].mxu1  ;;  %v2018_v10 = vadd.f32 %v2017_v6, %v2016_v3  ;;  %v2019_v12 = vpop.f32.mrb[2].mxu0 }
 0x1ce   : > { %v2082_v7 = vadd.f32 %v2081_v4, %v2080_v63  ;;  %v2083_v8 = vpop.f32.mrb[18].mxu1  ;;  %v2020_v18 = vpop.f32.mrb[3].mxu0 }
 0x1cf   : > { %v2084_v13 = vpop.f32.mrb[19].mxu1  ;;  %v1025_v20 = vadd.f32 %v2018_v10, %v3284_v56  ;;  %v2021_v24 = vadd.f32 %v2020_v18, %v2019_v12 }
 0x1d0   : > { %v2085_v19 = vadd.f32 %v2084_v13, %v2083_v8 }
 0x1d1   : > { %v1122_v25 = vadd.f32 %v2082_v7, %v1025_v20  ;;  %v1028_v26 = vadd.f32 %v2021_v24, %v3284_v56 }
 0x1d3   : > { %v1125_v27 = vadd.f32 %v2085_v19, %v1028_v26  ;;  %2277 = vtanh.f32 %v1122_v25 }
 0x1d4   : > { %v2022_v16 = vpop.f32.mrb[4].mxu0 }
 0x1d5   : > { %v2023_v52 = vpop.f32.mrb[5].mxu0  ;;  %2279 = vtanh.f32 %v1125_v27 }
 0x1d6   : > { %v2086_v55 = vpop.f32.mrb[20].mxu1  ;;  %v2024_v57 = vadd.f32 %v2023_v52, %v2022_v16  ;;  %v2025_v59 = vpop.f32.mrb[6].mxu0 }
 0x1d7   : > { %v2087_v1 = vpop.f32.mrb[21].mxu1  ;;  %v2026_v2 = vpop.f32.mrb[7].mxu0 }
 0x1d8   : > { %v1033_v9 = vadd.f32 %v2024_v57, %v3284_v56  ;;  %v2088_v11 = vadd.f32 %v2087_v1, %v2086_v55  ;;  %v2089_v14 = vpop.f32.mrb[22].mxu1  ;;  %v2027_v15 = vadd.f32 %v2026_v2, %v2025_v59  ;;  %v1057_v2 = vadd.f32 %v3269_v33, %v3284_v56 }
 0x1d9   : > { %v2090_v17 = vpop.f32.mrb[23].mxu1  ;;  %v1065_v33 = vadd.f32 %v3273_v39, %v3284_v56  ;;  %v1073_v39 = vadd.f32 %v3277_v45, %v3284_v56 }
 0x1da   : > { %v1130_v21 = vadd.f32 %v2088_v11, %v1033_v9  ;;  %v1036_v5 = vadd.f32 %v2027_v15, %v3284_v56  ;;  %v2091_v22 = vadd.f32 %v2090_v17, %v2089_v14  ;;  %v1060_v15 = vadd.f32 %v3271_v36, %v3284_v56 }
 0x1db   : > { %v1068_v36 = vadd.f32 %v3275_v42, %v3284_v56  ;;  %v1076_v42 = vadd.f32 %v3279_v48, %v3284_v56 }
 0x1dc   : > { %v1133_v23 = vadd.f32 %v2091_v22, %v1036_v5  ;;  %2281 = vtanh.f32 %v1130_v21 }
 0x1dd   : > { %v2278_v28 = vpop.eup %2277 }
 0x1de   : > { %2283 = vtanh.f32 %v1133_v23 }
 0x1df   : > { %v2280_v29 = vpop.eup %2279 }
 0x1e0   : > { %v1200_v30 = vpack.c.bf16 %v2280_v29, %v2278_v28 }
 0x1e2   : > { %v2028_v31 = vpop.f32.mrb[8].mxu0  ;;  %1349 = vmatmul.mubr.bf16.vlgmr.msra.gmra.mrb[16].mxu0 %v1200_v30 }
 0x1e3   : > { %v2029_v32 = vpop.f32.mrb[9].mxu0  ;;  %1358 = vmatprep.mubr.bf16.mxu0 %v2504_v0 }
 0x1e4   : > { %v2030_v35 = vadd.f32 %v2029_v32, %v2028_v31  ;;  %v2031_v37 = vpop.f32.mrb[10].mxu0 }
 0x1e5   : > { %v2092_v34 = vpop.f32.mrb[24].mxu1  ;;  %v2032_v40 = vpop.f32.mrb[11].mxu0 }
 0x1e6   : > { %v2093_v38 = vpop.f32.mrb[25].mxu1  ;;  %v1041_v41 = vadd.f32 %v2030_v35, %v3284_v56  ;;  %v2033_v46 = vadd.f32 %v2032_v40, %v2031_v37  ;;  %v2282_v47 = vpop.eup %2281 }
 0x1e7   : > { %v2094_v43 = vadd.f32 %v2093_v38, %v2092_v34  ;;  %v2095_v44 = vpop.f32.mrb[26].mxu1 }
 0x1e8   : > { %v2096_v49 = vpop.f32.mrb[27].mxu1  ;;  %v2284_v50 = vpop.eup %2283  ;;  %v1044_v54 = vadd.f32 %v2033_v46, %v3284_v56 }
 0x1e9   : > { %v1138_v53 = vadd.f32 %v2094_v43, %v1041_v41  ;;  %v2097_v58 = vadd.f32 %v2096_v49, %v2095_v44  ;;  %v1201_v61 = vpack.c.bf16 %v2284_v50, %v2282_v47 }
 0x1eb   : > { %v1141_v63 = vadd.f32 %v2097_v58, %v1044_v54  ;;  %2285 = vtanh.f32 %v1138_v53  ;;  %1359 = vmatmul.mubr.bf16.gmra.mrb[20].mxu0 %v1201_v61 }
 0x1ec   : > { %1368 = vmatprep.mubr.bf16.mxu0 %v2504_v0 }
 0x1ed   : > { %2287 = vtanh.f32 %v1141_v63  ;;  %v2034_v3 = vpop.f32.mrb[12].mxu0 }
 0x1ee   : > { %v2035_v4 = vpop.f32.mrb[13].mxu0 }
 0x1ef   : > { %v2098_v6 = vpop.f32.mrb[28].mxu1  ;;  %v2036_v7 = vadd.f32 %v2035_v4, %v2034_v3  ;;  %v2037_v8 = vpop.f32.mrb[14].mxu0 }
 0x1f0   : > { %v2099_v10 = vpop.f32.mrb[29].mxu1  ;;  %v2038_v12 = vpop.f32.mrb[15].mxu0 }
 0x1f1   : > { %v1049_v13 = vadd.f32 %v2036_v7, %v3284_v56  ;;  %v2100_v18 = vadd.f32 %v2099_v10, %v2098_v6  ;;  %v2101_v19 = vpop.f32.mrb[30].mxu1  ;;  %v2039_v20 = vadd.f32 %v2038_v12, %v2037_v8 }
 0x1f2   : > { %v2102_v24 = vpop.f32.mrb[31].mxu1 }
 0x1f3   : > { %v1146_v25 = vadd.f32 %v2100_v18, %v1049_v13  ;;  %v1052_v26 = vadd.f32 %v2039_v20, %v3284_v56  ;;  %v2103_v27 = vadd.f32 %v2102_v24, %v2101_v19 }
 0x1f5   : > { %v1149_v16 = vadd.f32 %v2103_v27, %v1052_v26  ;;  %v2286_v52 = vpop.eup %2285  ;;  %2289 = vtanh.f32 %v1146_v25 }
 0x1f7   : > { %v2288_v55 = vpop.eup %2287  ;;  %2291 = vtanh.f32 %v1149_v16 }
 0x1f8   : > { %v2104_v57 = vpop.f32.mrb[32].mxu1  ;;  %v1202_v1 = vpack.c.bf16 %v2288_v55, %v2286_v52 }
 0x1f9   : > { %v2105_v59 = vpop.f32.mrb[33].mxu1 }
 0x1fa   : > { %v2106_v9 = vadd.f32 %v2105_v59, %v2104_v57  ;;  %v2107_v11 = vpop.f32.mrb[34].mxu1  ;;  %1369 = vmatmul.mubr.bf16.gmra.mrb[24].mxu0 %v1202_v1 }
 0x1fb   : > { %v2108_v14 = vpop.f32.mrb[35].mxu1  ;;  %1378 = vmatprep.mubr.bf16.mxu0 %v2504_v0 }
 0x1fc   : > { %v1154_v17 = vadd.f32 %v2106_v9, %v1057_v2  ;;  %v2109_v21 = vadd.f32 %v2108_v14, %v2107_v11 }
 0x1fe   : > { %v1157_v5 = vadd.f32 %v2109_v21, %v1060_v15  ;;  %2293 = vtanh.f32 %v1154_v17 }
 0x1ff   : > { %v2290_v23 = vpop.eup %2289 }
 0x200   : > { %2295 = vtanh.f32 %v1157_v5  ;;  %v2110_v22 = vpop.f32.mrb[36].mxu1 }
 0x201   : > { %v2111_v28 = vpop.f32.mrb[37].mxu1  ;;  %v2292_v29 = vpop.eup %2291 }
 0x202   : > { %v2112_v30 = vadd.f32 %v2111_v28, %v2110_v22  ;;  %v2113_v31 = vpop.f32.mrb[38].mxu1  ;;  %v1203_v34 = vpack.c.bf16 %v2292_v29, %v2290_v23 }
 0x203   : > { %v2114_v32 = vpop.f32.mrb[39].mxu1 }
 0x204   : > { %v1162_v35 = vadd.f32 %v2112_v30, %v1065_v33  ;;  %v2115_v37 = vadd.f32 %v2114_v32, %v2113_v31  ;;  %1379 = vmatmul.mubr.bf16.gmra.mrb[28].mxu0 %v1203_v34 }
 0x205   : > { %1388 = vmatprep.mubr.bf16.mxu0 %v2504_v0 }
 0x206   : > { %v1165_v38 = vadd.f32 %v2115_v37, %v1068_v36  ;;  %2297 = vtanh.f32 %v1162_v35 }
 0x208   : > { %2299 = vtanh.f32 %v1165_v38  ;;  %v2116_v40 = vpop.f32.mrb[40].mxu1  ;;  %v2294_v41 = vpop.eup %2293 }
 0x209   : > { %v2117_v43 = vpop.f32.mrb[41].mxu1 }
 0x20a   : > { %v2296_v44 = vpop.eup %2295  ;;  %v2118_v46 = vadd.f32 %v2117_v43, %v2116_v40  ;;  %v2119_v47 = vpop.f32.mrb[42].mxu1 }
 0x20b   : > { %v2120_v49 = vpop.f32.mrb[43].mxu1  ;;  %v1204_v50 = vpack.c.bf16 %v2296_v44, %v2294_v41 }
 0x20c   : > { %v1170_v53 = vadd.f32 %v2118_v46, %v1073_v39  ;;  %v2121_v54 = vadd.f32 %v2120_v49, %v2119_v47 }
 0x20d   : > { %1389 = vmatmul.mubr.bf16.gmra.mrb[32].mxu0 %v1204_v50 }
 0x20e   : > { %v1173_v58 = vadd.f32 %v2121_v54, %v1076_v42  ;;  %1398 = vmatprep.mubr.bf16.mxu0 %v2504_v0  ;;  %2301 = vtanh.f32 %v1170_v53 }
 0x210   : > { %2303 = vtanh.f32 %v1173_v58  ;;  %v2122_v61 = vpop.f32.mrb[44].mxu1  ;;  %v2298_v63 = vpop.eup %2297 }
 0x211   : > { %v2123_v3 = vpop.f32.mrb[45].mxu1 }
 0x212   : > { %v2300_v4 = vpop.eup %2299  ;;  %v2124_v45 = vadd.f32 %v2123_v3, %v2122_v61  ;;  %v2125_v6 = vpop.f32.mrb[46].mxu1 }
 0x213   : > { %v2126_v7 = vpop.f32.mrb[47].mxu1  ;;  %v1205_v8 = vpack.c.bf16 %v2300_v4, %v2298_v63 }
 0x214   : > { %v1178_v10 = vadd.f32 %v2124_v45, %v3287_v60  ;;  %v2127_v12 = vadd.f32 %v2126_v7, %v2125_v6  ;;  %v1227_v60 = vshrl.u32 %v258_v51, 7 }
 0x215   : > { %1399 = vmatmul.mubr.bf16.gmra.mrb[36].mxu0 %v1205_v8 }
 0x216   : > { %v1181_v48 = vadd.f32 %v2127_v12, %v3290_v62  ;;  %1408 = vmatprep.mubr.bf16.mxu0 %v2504_v0  ;;  %2305 = vtanh.f32 %v1178_v10  ;;  %v1228_v25 = vsub.s32 0, %v1227_v60  ;;  %v1224_v62 = vld [vmem:[%s3710_s4] sm:$0x3]  ;;  %v1232_v26 = vsub.s32 1, %v1227_v60 }
 0x218   : > { %2307 = vtanh.f32 %v1181_v48  ;;  %v2302_v56 = vpop.eup %2301  ;;  %v3325_v27 = vrot.slane %v1224_v62, %v1228_v25  ;;  %v3327_v16 = vrot.slane %v1224_v62, %v1232_v26 }
 0x21a   : > { %v2304_v13 = vpop.eup %2303 }
 0x21b   : > { %v1206_v18 = vpack.c.bf16 %v2304_v13, %v2302_v56 }
 0x21d   : > { %1409 = vmatmul.mubr.bf16.gmra.mrb[40].mxu0 %v1206_v18 }
 0x21e   : > { %1418 = vmatprep.mubr.bf16.mxu0 %v2504_v0 }
 0x220   : > { %v2306_v19 = vpop.eup %2305 }
 0x222   : > { %v2308_v20 = vpop.eup %2307 }
 0x223   : > { %v1207_v24 = vpack.c.bf16 %v2308_v20, %v2306_v19 }
 0x225   : > { %1419 = vmatmul.mubr.bf16.gmra.mrb[44].mxu0 %v1207_v24 }
 0x2b5   : > { %v1350_v52 = vpop.f32.mrb[16].mxu0 }
 0x2b6   : > { %v3330_v55 = vadd.f32 %v1350_v52, %v3325_v27  ;;  %v1352_v0 = vpop.f32.mrb[17].mxu0 }
 0x2b7   : > { %v3333_v57 = vadd.f32 %v1352_v0, %v3327_v16  ;;  %v1354_v59 = vpop.f32.mrb[18].mxu0 }
 0x2b8   : > { %v3336_v51 = vadd.f32 %v1354_v59, %v3325_v27  ;;  %v1356_v1 = vpop.f32.mrb[19].mxu0 }
 0x2b9   : > { %v3339_v2 = vadd.f32 %v1356_v1, %v3327_v16  ;;  %v1429_v9 = vmax.f32 %v3330_v55, %v3333_v57 }
 0x2bb   : > { %1430 = vmax.xlane.f32.xlu1 %v1429_v9  ;;  %v1432_v11 = vmax.f32 %v3336_v51, %v3339_v2 }
 0x2bd   : > { %1433 = vmax.xlane.f32.xlu0 %v1432_v11 }
 0x2be   : > { %v1360_v14 = vpop.f32.mrb[20].mxu0 }
 0x2bf   : > { %v3346_v15 = vadd.f32 %v1360_v14, %v3325_v27  ;;  %v1362_v17 = vpop.f32.mrb[21].mxu0 }
 0x2c0   : > { %v3349_v21 = vadd.f32 %v1362_v17, %v3327_v16  ;;  %v1364_v5 = vpop.f32.mrb[22].mxu0 }
 0x2c1   : > { %v3352_v22 = vadd.f32 %v1364_v5, %v3325_v27  ;;  %v1366_v23 = vpop.f32.mrb[23].mxu0 }
 0x2c2   : > { %v3355_v28 = vadd.f32 %v1366_v23, %v3327_v16  ;;  %v1435_v29 = vmax.f32 %v3346_v15, %v3349_v21 }
 0x2c4   : > { %1436 = vmax.xlane.f32.xlu0 %v1435_v29  ;;  %v1438_v33 = vmax.f32 %v3352_v22, %v3355_v28 }
 0x2c6   : > { %1439 = vmax.xlane.f32.xlu1 %v1438_v33 }
 0x2cd   : > { %v1370_v30 = vpop.f32.mrb[24].mxu0 }
 0x2ce   : > { %v3362_v31 = vadd.f32 %v1370_v30, %v3325_v27  ;;  %v1372_v32 = vpop.f32.mrb[25].mxu0 }
 0x2cf   : > { %v3365_v34 = vadd.f32 %v1372_v32, %v3327_v16  ;;  %v1374_v36 = vpop.f32.mrb[26].mxu0 }
 0x2d0   : > { %v3368_v35 = vadd.f32 %v1374_v36, %v3325_v27  ;;  %v1376_v37 = vpop.f32.mrb[27].mxu0 }
 0x2d1   : > { %v3371_v38 = vadd.f32 %v1376_v37, %v3327_v16  ;;  %v1441_v40 = vmax.f32 %v3362_v31, %v3365_v34 }
 0x2d3   : > { %1442 = vmax.xlane.f32.xlu0 %v1441_v40  ;;  %v1444_v41 = vmax.f32 %v3368_v35, %v3371_v38 }
 0x2d5   : > { %1445 = vmax.xlane.f32.xlu1 %v1444_v41 }
 0x2d7   : > { %v1380_v43 = vpop.f32.mrb[28].mxu0 }
 0x2d8   : > { %v3378_v44 = vadd.f32 %v1380_v43, %v3325_v27  ;;  %v1382_v39 = vpop.f32.mrb[29].mxu0 }
 0x2d9   : > { %v3381_v46 = vadd.f32 %v1382_v39, %v3327_v16  ;;  %v1384_v47 = vpop.f32.mrb[30].mxu0 }
 0x2da   : > { %v3384_v49 = vadd.f32 %v1384_v47, %v3325_v27  ;;  %v1386_v50 = vpop.f32.mrb[31].mxu0 }
 0x2db   : > { %v3387_v42 = vadd.f32 %v1386_v50, %v3327_v16  ;;  %v1447_v53 = vmax.f32 %v3378_v44, %v3381_v46 }
 0x2dd   : > { %1448 = vmax.xlane.f32.xlu0 %v1447_v53  ;;  %v1450_v54 = vmax.f32 %v3384_v49, %v3387_v42 }
 0x2df   : > { %1451 = vmax.xlane.f32.xlu1 %v1450_v54 }
 0x2e0   : > { %v1390_v58 = vpop.f32.mrb[32].mxu0 }
 0x2e1   : > { %v3394_v61 = vadd.f32 %v1390_v58, %v3325_v27  ;;  %v1392_v63 = vpop.f32.mrb[33].mxu0 }
 0x2e2   : > { %v3397_v3 = vadd.f32 %v1392_v63, %v3327_v16  ;;  %v1394_v4 = vpop.f32.mrb[34].mxu0 }
 0x2e3   : > { %v3400_v45 = vadd.f32 %v1394_v4, %v3325_v27  ;;  %v1396_v6 = vpop.f32.mrb[35].mxu0 }
 0x2e4   : > { %v3403_v7 = vadd.f32 %v1396_v6, %v3327_v16  ;;  %v1453_v8 = vmax.f32 %v3394_v61, %v3397_v3 }
 0x2e6   : > { %1454 = vmax.xlane.f32.xlu0 %v1453_v8  ;;  %v1456_v10 = vmax.f32 %v3400_v45, %v3403_v7 }
 0x2e8   : > { %v1400_v12 = vpop.f32.mrb[36].mxu0  ;;  %1457 = vmax.xlane.f32.xlu1 %v1456_v10 }
 0x2e9   : > { %v3410_v48 = vadd.f32 %v1400_v12, %v3325_v27  ;;  %v1402_v56 = vpop.f32.mrb[37].mxu0 }
 0x2ea   : > { %v3413_v13 = vadd.f32 %v1402_v56, %v3327_v16  ;;  %v1404_v18 = vpop.f32.mrb[38].mxu0 }
 0x2eb   : > { %v3416_v19 = vadd.f32 %v1404_v18, %v3325_v27  ;;  %v1406_v20 = vpop.f32.mrb[39].mxu0 }
 0x2ec   : > { %v3419_v24 = vadd.f32 %v1406_v20, %v3327_v16  ;;  %v1459_v60 = vmax.f32 %v3410_v48, %v3413_v13 }
 0x2ee   : > { %1460 = vmax.xlane.f32.xlu0 %v1459_v60  ;;  %v1462_v25 = vmax.f32 %v3416_v19, %v3419_v24 }
 0x2f0   : > { %v1410_v62 = vpop.f32.mrb[40].mxu0  ;;  %1463 = vmax.xlane.f32.xlu1 %v1462_v25 }
 0x2f1   : > { %v3426_v26 = vadd.f32 %v1410_v62, %v3325_v27  ;;  %v1412_v52 = vpop.f32.mrb[41].mxu0 }
 0x2f2   : > { %v3429_v0 = vadd.f32 %v1412_v52, %v3327_v16  ;;  %v1414_v59 = vpop.f32.mrb[42].mxu0 }
 0x2f3   : > { %v3432_v1 = vadd.f32 %v1414_v59, %v3325_v27  ;;  %v1416_v9 = vpop.f32.mrb[43].mxu0 }
 0x2f4   : > { %v3435_v11 = vadd.f32 %v1416_v9, %v3327_v16  ;;  %v1465_v14 = vmax.f32 %v3426_v26, %v3429_v0 }
 0x2f6   : > { %1466 = vmax.xlane.f32.xlu0 %v1465_v14  ;;  %v1468_v17 = vmax.f32 %v3432_v1, %v3435_v11 }
 0x2f8   : > { %v1420_v5 = vpop.f32.mrb[44].mxu0  ;;  %1469 = vmax.xlane.f32.xlu1 %v1468_v17 }
 0x2f9   : > { %v3442_v23 = vadd.f32 %v1420_v5, %v3325_v27  ;;  %v1422_v29 = vpop.f32.mrb[45].mxu0 }
 0x2fa   : > { %v3445_v33 = vadd.f32 %v1422_v29, %v3327_v16  ;;  %v1424_v30 = vpop.f32.mrb[46].mxu0 }
 0x2fb   : > { %v3448_v32 = vadd.f32 %v1424_v30, %v3325_v27  ;;  %v1426_v36 = vpop.f32.mrb[47].mxu0 }
 0x2fc   : > { %v3451_v37 = vadd.f32 %v1426_v36, %v3327_v16  ;;  %v1471_v40 = vmax.f32 %v3442_v23, %v3445_v33 }
 0x2fe   : > { %1472 = vmax.xlane.f32.xlu0 %v1471_v40  ;;  %v1474_v41 = vmax.f32 %v3448_v32, %v3451_v37 }
 0x300   : > { %1475 = vmax.xlane.f32.xlu1 %v1474_v41 }
 0x348   : > { %v1431_v43 = vpop.xlane.xlu1 %1430 }
 0x349   : > { %v3458_v39 = vsub.f32 %v3330_v55, %v1431_v43  ;;  %v3461_v47 = vsub.f32 %v3333_v57, %v1431_v43 }
 0x34a   : > { %v1434_v27 = vpop.xlane.xlu0 %1433 }
 0x34b   : > { %v1509_v50 = vmul.f32 1.442695, %v3458_v39  ;;  %v1511_v16 = vmul.f32 1.442695, %v3461_v47  ;;  %v3466_v53 = vsub.f32 %v3336_v51, %v1434_v27  ;;  %v3469_v54 = vsub.f32 %v3339_v2, %v1434_v27 }
 0x34d   : > { %2309 = vpow2.f32 %v1509_v50  ;;  %v1513_v58 = vmul.f32 1.442695, %v3466_v53  ;;  %v1515_v55 = vmul.f32 1.442695, %v3469_v54 }
 0x34e   : > { %2311 = vpow2.f32 %v1511_v16 }
 0x34f   : > { %2313 = vpow2.f32 %v1513_v58 }
 0x350   : > { %2315 = vpow2.f32 %v1515_v55 }
 0x351   : > { %v1437_v57 = vpop.xlane.xlu0 %1436 }
 0x352   : > { %v3474_v63 = vsub.f32 %v3346_v15, %v1437_v57  ;;  %v3477_v4 = vsub.f32 %v3349_v21, %v1437_v57 }
 0x353   : > { %v1440_v51 = vpop.xlane.xlu1 %1439 }
 0x354   : > { %v1517_v6 = vmul.f32 1.442695, %v3474_v63  ;;  %v1519_v2 = vmul.f32 1.442695, %v3477_v4  ;;  %v3482_v8 = vsub.f32 %v3352_v22, %v1440_v51  ;;  %v3485_v10 = vsub.f32 %v3355_v28, %v1440_v51 }
 0x356   : > { %2317 = vpow2.f32 %v1517_v6  ;;  %v1521_v12 = vmul.f32 1.442695, %v3482_v8  ;;  %v1523_v15 = vmul.f32 1.442695, %v3485_v10 }
 0x357   : > { %2319 = vpow2.f32 %v1519_v2  ;;  %v2310_v56 = vpop.eup %2309 }
 0x358   : > { %2321 = vpow2.f32 %v1521_v12  ;;  %v2312_v21 = vpop.eup %2311 }
 0x359   : > { %2323 = vpow2.f32 %v1523_v15  ;;  %v2314_v18 = vpop.eup %2313  ;;  %v1573_v20 = vadd.f32 %v2312_v21, %v2310_v56 }
 0x35a   : > { %v2316_v60 = vpop.eup %2315 }
 0x35b   : > { %1574 = vadd.xlane.f32.xlu0 %v1573_v20  ;;  %v1576_v25 = vadd.f32 %v2316_v60, %v2314_v18 }
 0x35d   : > { %1577 = vadd.xlane.f32.xlu1 %v1576_v25 }
 0x360   : > { %v1443_v22 = vpop.xlane.xlu0 %1442  ;;  %v2318_v62 = vpop.eup %2317 }
 0x361   : > { %v3490_v28 = vsub.f32 %v3362_v31, %v1443_v22  ;;  %v3493_v52 = vsub.f32 %v3365_v34, %v1443_v22  ;;  %v2320_v59 = vpop.eup %2319 }
 0x362   : > { %v1446_v9 = vpop.xlane.xlu1 %1445  ;;  %v2322_v14 = vpop.eup %2321  ;;  %v1579_v40 = vadd.f32 %v2320_v59, %v2318_v62 }
 0x363   : > { %v1525_v17 = vmul.f32 1.442695, %v3490_v28  ;;  %v1527_v5 = vmul.f32 1.442695, %v3493_v52  ;;  %v3498_v29 = vsub.f32 %v3368_v35, %v1446_v9  ;;  %v3501_v30 = vsub.f32 %v3371_v38, %v1446_v9  ;;  %v2324_v36 = vpop.eup %2323 }
 0x364   : > { %v1582_v41 = vadd.f32 %v2324_v36, %v2322_v14  ;;  %1580 = vadd.xlane.f32.xlu0 %v1579_v40 }
 0x365   : > { %2325 = vpow2.f32 %v1525_v17  ;;  %v1529_v31 = vmul.f32 1.442695, %v3498_v29  ;;  %v1531_v34 = vmul.f32 1.442695, %v3501_v30 }
 0x366   : > { %2327 = vpow2.f32 %v1527_v5  ;;  %1583 = vadd.xlane.f32.xlu1 %v1582_v41 }
 0x367   : > { %2329 = vpow2.f32 %v1529_v31 }
 0x368   : > { %2331 = vpow2.f32 %v1531_v34 }
 0x36a   : > { %v1449_v43 = vpop.xlane.xlu0 %1448 }
 0x36b   : > { %v3506_v35 = vsub.f32 %v3378_v44, %v1449_v43  ;;  %v3509_v38 = vsub.f32 %v3381_v46, %v1449_v43 }
 0x36c   : > { %v1452_v27 = vpop.xlane.xlu1 %1451 }
 0x36d   : > { %v1533_v50 = vmul.f32 1.442695, %v3506_v35  ;;  %v1535_v16 = vmul.f32 1.442695, %v3509_v38  ;;  %v3514_v58 = vsub.f32 %v3384_v49, %v1452_v27  ;;  %v3517_v55 = vsub.f32 %v3387_v42, %v1452_v27 }
 0x36f   : > { %v2326_v57 = vpop.eup %2325  ;;  %2333 = vpow2.f32 %v1533_v50  ;;  %v1537_v51 = vmul.f32 1.442695, %v3514_v58  ;;  %v1539_v44 = vmul.f32 1.442695, %v3517_v55 }
 0x370   : > { %v2328_v6 = vpop.eup %2327  ;;  %2335 = vpow2.f32 %v1535_v16 }
 0x371   : > { %v2330_v46 = vpop.eup %2329  ;;  %2337 = vpow2.f32 %v1537_v51  ;;  %v1585_v2 = vadd.f32 %v2328_v6, %v2326_v57 }
 0x372   : > { %v2332_v12 = vpop.eup %2331  ;;  %2339 = vpow2.f32 %v1539_v44 }
 0x373   : > { %v1455_v15 = vpop.xlane.xlu0 %1454  ;;  %1586 = vadd.xlane.f32.xlu0 %v1585_v2  ;;  %v1588_v56 = vadd.f32 %v2332_v12, %v2330_v46 }
 0x374   : > { %v3522_v49 = vsub.f32 %v3394_v61, %v1455_v15  ;;  %v3525_v42 = vsub.f32 %v3397_v3, %v1455_v15 }
 0x375   : > { %v1458_v21 = vpop.xlane.xlu1 %1457  ;;  %1589 = vadd.xlane.f32.xlu1 %v1588_v56 }
 0x376   : > { %v1541_v18 = vmul.f32 1.442695, %v3522_v49  ;;  %v1543_v20 = vmul.f32 1.442695, %v3525_v42  ;;  %v3530_v60 = vsub.f32 %v3400_v45, %v1458_v21  ;;  %v3533_v25 = vsub.f32 %v3403_v7, %v1458_v21 }
 0x378   : > { %2341 = vpow2.f32 %v1541_v18  ;;  %v1545_v61 = vmul.f32 1.442695, %v3530_v60  ;;  %v1547_v22 = vmul.f32 1.442695, %v3533_v25 }
 0x379   : > { %2343 = vpow2.f32 %v1543_v20  ;;  %v2334_v3 = vpop.eup %2333 }
 0x37a   : > { %2345 = vpow2.f32 %v1545_v61  ;;  %v2336_v62 = vpop.eup %2335 }
 0x37b   : > { %2347 = vpow2.f32 %v1547_v22  ;;  %v1461_v59 = vpop.xlane.xlu0 %1460  ;;  %v2338_v9 = vpop.eup %2337  ;;  %v1591_v7 = vadd.f32 %v2336_v62, %v2334_v3 }
 0x37c   : > { %v3538_v14 = vsub.f32 %v3410_v48, %v1461_v59  ;;  %v3541_v45 = vsub.f32 %v3413_v13, %v1461_v59  ;;  %v2340_v17 = vpop.eup %2339 }
 0x37d   : > { %v1464_v5 = vpop.xlane.xlu1 %1463  ;;  %1592 = vadd.xlane.f32.xlu0 %v1591_v7  ;;  %v1594_v41 = vadd.f32 %v2340_v17, %v2338_v9 }
 0x37e   : > { %v1549_v36 = vmul.f32 1.442695, %v3538_v14  ;;  %v1551_v40 = vmul.f32 1.442695, %v3541_v45  ;;  %v3546_v31 = vsub.f32 %v3416_v19, %v1464_v5  ;;  %v3549_v34 = vsub.f32 %v3419_v24, %v1464_v5 }
 0x37f   : > { %1595 = vadd.xlane.f32.xlu1 %v1594_v41 }
 0x380   : > { %2349 = vpow2.f32 %v1549_v36  ;;  %v1553_v48 = vmul.f32 1.442695, %v3546_v31  ;;  %v1555_v13 = vmul.f32 1.442695, %v3549_v34 }
 0x381   : > { %2351 = vpow2.f32 %v1551_v40 }
 0x382   : > { %v2342_v43 = vpop.eup %2341  ;;  %2353 = vpow2.f32 %v1553_v48 }
 0x383   : > { %v2344_v27 = vpop.eup %2343  ;;  %2355 = vpow2.f32 %v1555_v13  ;;  %v1467_v50 = vpop.xlane.xlu0 %1466 }
 0x384   : > { %v2346_v16 = vpop.eup %2345  ;;  %v3554_v19 = vsub.f32 %v3426_v26, %v1467_v50  ;;  %v3557_v24 = vsub.f32 %v3429_v0, %v1467_v50  ;;  %v1597_v57 = vadd.f32 %v2344_v27, %v2342_v43 }
 0x385   : > { %v2348_v51 = vpop.eup %2347  ;;  %v1470_v44 = vpop.xlane.xlu1 %1469 }
 0x386   : > { %v1557_v6 = vmul.f32 1.442695, %v3554_v19  ;;  %v1559_v46 = vmul.f32 1.442695, %v3557_v24  ;;  %v3562_v2 = vsub.f32 %v3432_v1, %v1470_v44  ;;  %v3565_v12 = vsub.f32 %v3435_v11, %v1470_v44  ;;  %1598 = vadd.xlane.f32.xlu0 %v1597_v57 }
 0x387   : > { %v1600_v15 = vadd.f32 %v2348_v51, %v2346_v16 }
 0x388   : > { %2357 = vpow2.f32 %v1557_v6  ;;  %v1561_v26 = vmul.f32 1.442695, %v3562_v2  ;;  %v1563_v0 = vmul.f32 1.442695, %v3565_v12 }
 0x389   : > { %2359 = vpow2.f32 %v1559_v46  ;;  %1601 = vadd.xlane.f32.xlu1 %v1600_v15 }
 0x38a   : > { %v2350_v56 = vpop.eup %2349  ;;  %2361 = vpow2.f32 %v1561_v26 }
 0x38b   : > { %v2352_v21 = vpop.eup %2351  ;;  %2363 = vpow2.f32 %v1563_v0  ;;  %v1473_v18 = vpop.xlane.xlu0 %1472 }
 0x38c   : > { %v2354_v20 = vpop.eup %2353  ;;  %v3570_v1 = vsub.f32 %v3442_v23, %v1473_v18  ;;  %v3573_v11 = vsub.f32 %v3445_v33, %v1473_v18  ;;  %v1603_v61 = vadd.f32 %v2352_v21, %v2350_v56 }
 0x38d   : > { %v2356_v22 = vpop.eup %2355  ;;  %v1476_v3 = vpop.xlane.xlu1 %1475 }
 0x38e   : > { %v1565_v62 = vmul.f32 1.442695, %v3570_v1  ;;  %v1567_v59 = vmul.f32 1.442695, %v3573_v11  ;;  %v3578_v9 = vsub.f32 %v3448_v32, %v1476_v3  ;;  %v3581_v7 = vsub.f32 %v3451_v37, %v1476_v3  ;;  %1604 = vadd.xlane.f32.xlu0 %v1603_v61 }
 0x38f   : > { %v1606_v17 = vadd.f32 %v2356_v22, %v2354_v20 }
 0x390   : > { %2365 = vpow2.f32 %v1565_v62  ;;  %v1569_v23 = vmul.f32 1.442695, %v3578_v9  ;;  %v1571_v33 = vmul.f32 1.442695, %v3581_v7 }
 0x391   : > { %2367 = vpow2.f32 %v1567_v59  ;;  %1607 = vadd.xlane.f32.xlu1 %v1606_v17 }
 0x392   : > { %v2358_v5 = vpop.eup %2357  ;;  %2369 = vpow2.f32 %v1569_v23 }
 0x393   : > { %v2360_v36 = vpop.eup %2359  ;;  %2371 = vpow2.f32 %v1571_v33 }
 0x394   : > { %v2362_v40 = vpop.eup %2361  ;;  %v1609_v41 = vadd.f32 %v2360_v36, %v2358_v5 }
 0x395   : > { %v2364_v32 = vpop.eup %2363 }
 0x396   : > { %1610 = vadd.xlane.f32.xlu0 %v1609_v41  ;;  %v1612_v37 = vadd.f32 %v2364_v32, %v2362_v40 }
 0x398   : > { %1613 = vadd.xlane.f32.xlu1 %v1612_v37 }
 0x39a   : > { %v2366_v48 = vpop.eup %2365 }
 0x39b   : > { %v2368_v13 = vpop.eup %2367 }
 0x39c   : > { %v2370_v43 = vpop.eup %2369  ;;  %v1615_v27 = vadd.f32 %v2368_v13, %v2366_v48 }
 0x39d   : > { %v2372_v50 = vpop.eup %2371 }
 0x39e   : > { %1616 = vadd.xlane.f32.xlu0 %v1615_v27  ;;  %v1618_v16 = vadd.f32 %v2372_v50, %v2370_v43 }
 0x3a0   : > { %1619 = vadd.xlane.f32.xlu1 %v1618_v16 }
 0x3e8   : > { %v1575_v57 = vpop.xlane.xlu0 %1574 }
 0x3e9   : > { %2373 = vlog2.f32 %v1575_v57 }
 0x3ea   : > { %v1578_v51 = vpop.xlane.xlu1 %1577 }
 0x3eb   : > { %2375 = vlog2.f32 %v1578_v51 }
 0x3f1   : > { %v1581_v44 = vpop.xlane.xlu0 %1580 }
 0x3f2   : > { %2377 = vlog2.f32 %v1581_v44 }
 0x3f3   : > { %v1584_v6 = vpop.xlane.xlu1 %1583  ;;  %v2374_v46 = vpop.eup %2373 }
 0x3f4   : > { %2379 = vlog2.f32 %v1584_v6  ;;  %v1622_v15 = vmul.f32 0.6931472, %v2374_v46 }
 0x3f5   : > { %v2376_v26 = vpop.eup %2375 }
 0x3f6   : > { %v1653_v0 = vsub.f32 %v3458_v39, %v1622_v15  ;;  %v1654_v56 = vsub.f32 %v3461_v47, %v1622_v15  ;;  %v1624_v21 = vmul.f32 0.6931472, %v2376_v26 }
 0x3f8   : > { %1685 = vst [vmem:[%s3590_s17] sm:$0xff] %v1653_v0  ;;  %1686 = vst [vmem:[%s3590_s17 + $0x8] sm:$0xff] %v1654_v56  ;;  %v1655_v18 = vsub.f32 %v3466_v53, %v1624_v21  ;;  %v1656_v20 = vsub.f32 %v3469_v54, %v1624_v21 }
 0x3fa   : > { %1687 = vst [vmem:[%s3590_s17 + $0x10] sm:$0xff] %v1655_v18  ;;  %1688 = vst [vmem:[%s3590_s17 + $0x18] sm:$0xff] %v1656_v20 }
 0x3fc   : > { %v2378_v39 = vpop.eup %2377 }
 0x3fd   : > { %v1626_v61 = vmul.f32 0.6931472, %v2378_v39 }
 0x3fe   : > { %v2380_v47 = vpop.eup %2379 }
 0x3ff   : > { %v1628_v22 = vmul.f32 0.6931472, %v2380_v47  ;;  %v1657_v62 = vsub.f32 %v3474_v63, %v1626_v61  ;;  %v1658_v59 = vsub.f32 %v3477_v4, %v1626_v61 }
 0x400   : > { %v1587_v3 = vpop.xlane.xlu0 %1586 }
 0x401   : > { %2381 = vlog2.f32 %v1587_v3  ;;  %v1659_v17 = vsub.f32 %v3482_v8, %v1628_v22  ;;  %v1660_v53 = vsub.f32 %v3485_v10, %v1628_v22  ;;  %1689 = vst [vmem:[%s3590_s17 + $0x20] sm:$0xff] %v1657_v62  ;;  %1690 = vst [vmem:[%s3590_s17 + $0x28] sm:$0xff] %v1658_v59 }
 0x402   : > { %v1590_v23 = vpop.xlane.xlu1 %1589 }
 0x403   : > { %2383 = vlog2.f32 %v1590_v23  ;;  %1691 = vst [vmem:[%s3590_s17 + $0x30] sm:$0xff] %v1659_v17  ;;  %1692 = vst [vmem:[%s3590_s17 + $0x38] sm:$0xff] %v1660_v53 }
 0x40a   : > { %v1593_v54 = vpop.xlane.xlu0 %1592 }
 0x40b   : > { %v2382_v33 = vpop.eup %2381  ;;  %2385 = vlog2.f32 %v1593_v54 }
 0x40c   : > { %v1630_v63 = vmul.f32 0.6931472, %v2382_v33  ;;  %v1596_v5 = vpop.xlane.xlu1 %1595 }
 0x40d   : > { %v2384_v4 = vpop.eup %2383  ;;  %2387 = vlog2.f32 %v1596_v5 }
 0x40e   : > { %v1661_v8 = vsub.f32 %v3490_v28, %v1630_v63  ;;  %v1662_v10 = vsub.f32 %v3493_v52, %v1630_v63  ;;  %v1632_v36 = vmul.f32 0.6931472, %v2384_v4 }
 0x410   : > { %1693 = vst [vmem:[%s3590_s17 + $0x40] sm:$0xff] %v1661_v8  ;;  %1694 = vst [vmem:[%s3590_s17 + $0x48] sm:$0xff] %v1662_v10  ;;  %v1663_v40 = vsub.f32 %v3498_v29, %v1632_v36  ;;  %v1664_v41 = vsub.f32 %v3501_v30, %v1632_v36 }
 0x412   : > { %1695 = vst [vmem:[%s3590_s17 + $0x50] sm:$0xff] %v1663_v40  ;;  %1696 = vst [vmem:[%s3590_s17 + $0x58] sm:$0xff] %v1664_v41 }
 0x413   : > { %v1599_v32 = vpop.xlane.xlu0 %1598 }
 0x414   : > { %2389 = vlog2.f32 %v1599_v32 }
 0x415   : > { %v2386_v37 = vpop.eup %2385 }
 0x416   : > { %v1602_v28 = vpop.xlane.xlu1 %1601  ;;  %v1634_v48 = vmul.f32 0.6931472, %v2386_v37 }
 0x417   : > { %2391 = vlog2.f32 %v1602_v28  ;;  %v2388_v52 = vpop.eup %2387 }
 0x418   : > { %v1665_v13 = vsub.f32 %v3506_v35, %v1634_v48  ;;  %v1666_v43 = vsub.f32 %v3509_v38, %v1634_v48  ;;  %v1636_v27 = vmul.f32 0.6931472, %v2388_v52 }
 0x41a   : > { %1697 = vst [vmem:[%s3590_s17 + $0x60] sm:$0xff] %v1665_v13  ;;  %1698 = vst [vmem:[%s3590_s17 + $0x68] sm:$0xff] %v1666_v43  ;;  %v1667_v30 = vsub.f32 %v3514_v58, %v1636_v27  ;;  %v1668_v50 = vsub.f32 %v3517_v55, %v1636_v27 }
 0x41b   : > { %v1605_v29 = vpop.xlane.xlu0 %1604 }
 0x41c   : > { %2393 = vlog2.f32 %v1605_v29  ;;  %1699 = vst [vmem:[%s3590_s17 + $0x70] sm:$0xff] %v1667_v30  ;;  %1700 = vst [vmem:[%s3590_s17 + $0x78] sm:$0xff] %v1668_v50 }
 0x41e   : > { %v2390_v16 = vpop.eup %2389  ;;  %v1608_v57 = vpop.xlane.xlu1 %1607 }
 0x41f   : > { %v1638_v35 = vmul.f32 0.6931472, %v2390_v16  ;;  %2395 = vlog2.f32 %v1608_v57 }
 0x421   : > { %v2392_v38 = vpop.eup %2391  ;;  %v1669_v51 = vsub.f32 %v3522_v49, %v1638_v35  ;;  %v1670_v44 = vsub.f32 %v3525_v42, %v1638_v35 }
 0x422   : > { %v1640_v6 = vmul.f32 0.6931472, %v2392_v38 }
 0x423   : > { %1701 = vst [vmem:[%s3590_s17 + $0x80] sm:$0xff] %v1669_v51  ;;  %1702 = vst [vmem:[%s3590_s17 + $0x88] sm:$0xff] %v1670_v44  ;;  %v1611_v58 = vpop.xlane.xlu0 %1610 }
 0x424   : > { %v1671_v55 = vsub.f32 %v3530_v60, %v1640_v6  ;;  %v1672_v46 = vsub.f32 %v3533_v25, %v1640_v6  ;;  %2397 = vlog2.f32 %v1611_v58 }
 0x425   : > { %v1614_v15 = vpop.xlane.xlu1 %1613 }
 0x426   : > { %v2394_v26 = vpop.eup %2393  ;;  %1703 = vst [vmem:[%s3590_s17 + $0x90] sm:$0xff] %v1671_v55  ;;  %1704 = vst [vmem:[%s3590_s17 + $0x98] sm:$0xff] %v1672_v46  ;;  %2399 = vlog2.f32 %v1614_v15 }
 0x427   : > { %v1642_v49 = vmul.f32 0.6931472, %v2394_v26 }
 0x429   : > { %v2396_v42 = vpop.eup %2395  ;;  %v1673_v0 = vsub.f32 %v3538_v14, %v1642_v49  ;;  %v1674_v56 = vsub.f32 %v3541_v45, %v1642_v49 }
 0x42a   : > { %v1644_v21 = vmul.f32 0.6931472, %v2396_v42 }
 0x42b   : > { %1705 = vst [vmem:[%s3590_s17 + $0xa0] sm:$0xff] %v1673_v0  ;;  %1706 = vst [vmem:[%s3590_s17 + $0xa8] sm:$0xff] %v1674_v56  ;;  %v1617_v60 = vpop.xlane.xlu0 %1616 }
 0x42c   : > { %v1675_v25 = vsub.f32 %v3546_v31, %v1644_v21  ;;  %v1676_v18 = vsub.f32 %v3549_v34, %v1644_v21  ;;  %2401 = vlog2.f32 %v1617_v60 }
 0x42d   : > { %v1620_v20 = vpop.xlane.xlu1 %1619 }
 0x42e   : > { %v2398_v39 = vpop.eup %2397  ;;  %1707 = vst [vmem:[%s3590_s17 + $0xb0] sm:$0xff] %v1675_v25  ;;  %1708 = vst [vmem:[%s3590_s17 + $0xb8] sm:$0xff] %v1676_v18  ;;  %2403 = vlog2.f32 %v1620_v20 }
 0x42f   : > { %v1646_v14 = vmul.f32 0.6931472, %v2398_v39 }
 0x430   : > { %v2400_v45 = vpop.eup %2399 }
 0x431   : > { %v1677_v47 = vsub.f32 %v3554_v19, %v1646_v14  ;;  %v1678_v61 = vsub.f32 %v3557_v24, %v1646_v14  ;;  %v1648_v22 = vmul.f32 0.6931472, %v2400_v45 }
 0x433   : > { %1709 = vst [vmem:[%s3590_s17 + $0xc0] sm:$0xff] %v1677_v47  ;;  %1710 = vst [vmem:[%s3590_s17 + $0xc8] sm:$0xff] %v1678_v61  ;;  %v1679_v31 = vsub.f32 %v3562_v2, %v1648_v22  ;;  %v1680_v34 = vsub.f32 %v3565_v12, %v1648_v22 }
 0x435   : > { %1711 = vst [vmem:[%s3590_s17 + $0xd0] sm:$0xff] %v1679_v31  ;;  %1712 = vst [vmem:[%s3590_s17 + $0xd8] sm:$0xff] %v1680_v34 }
 0x436   : > { %v2402_v3 = vpop.eup %2401 }
 0x437   : > { %v1650_v62 = vmul.f32 0.6931472, %v2402_v3 }
 0x438   : > { %v2404_v19 = vpop.eup %2403 }
 0x439   : > { %v1681_v24 = vsub.f32 %v3570_v1, %v1650_v62  ;;  %v1682_v59 = vsub.f32 %v3573_v11, %v1650_v62  ;;  %v1652_v17 = vmul.f32 0.6931472, %v2404_v19 }
 0x43b   : > { %1713 = vst [vmem:[%s3590_s17 + $0xe0] sm:$0xff] %v1681_v24  ;;  %1714 = vst [vmem:[%s3590_s17 + $0xe8] sm:$0xff] %v1682_v59  ;;  %v1683_v2 = vsub.f32 %v3578_v9, %v1652_v17  ;;  %v1684_v12 = vsub.f32 %v3581_v7, %v1652_v17 }
 0x43d   : > { %1715 = vst [vmem:[%s3590_s17 + $0xf0] sm:$0xff] %v1683_v2  ;;  %1716 = vst [vmem:[%s3590_s17 + $0xf8] sm:$0xff] %v1684_v12 }
 0x43e   : > { %2446 = shalt.err (!%p2443_p7)
}
 0x43f   : > { %s2447_s12 = scalar_lea.hbm %s3653_s8, 4096  ;;  %s2451_s14 = scalar_lea.hbm %s3711_s5, 8192 }
 0x440   : > { %p2448_p8 = scmp.ne.s32.totalorder %s3653_s8, %s2447_s12  ;;  %p2452_p1 = scmp.lt.u32.totalorder %s3653_s8, %s3711_s5 }
 0x441   : > { %p2453_p0 = scmp.lt.u32.totalorder %s2451_s14, %s2447_s12  ;;  %p2455_p6 = scmp.lt.u32.totalorder %s2447_s12, %s3653_s8 }
 0x442   : > { %p2449_p11 = pnand %p2448_p8, %p3835_p9 }
 0x443   : > { %p2454_p5 = por %p2453_p0, %p2452_p1 }
 0x444   : > { %p2450_p13 = pneg %p2449_p11 }
 0x445   : > { %p2456_p10 = por %p2455_p6, %p2454_p5 }
 0x447   : > { %p2457_p12 = pnand %p2456_p10, %p2450_p13 }
 0x449   : > { %2460 = shalt.err (!%p2457_p12)
}
 0x44a   : > { %s2508_s17 = smov 256   ;;  %s2509_s23 = smov 16  }
 0x44b   : > { %2148 = dma.vmem_to_hbm [thread:$0]  (%p3835_p9), %s3655_s25, 4096, %s3653_s8, %s3665_s22, %s2508_s17, %s2508_s17, %s2509_s23  }
 0x44c PF: > { %p2160_p2 = scmp.ge.s32.totalorder %s2499_s21, 2  ;;  %s1747_s26 = sand.u32 1, %s2487_s18  }
 0x44d   : > { %p3836_p3 = scmp.ne.s32.totalorder %s3728_s29, 0  ;;  %s1748_s6 = scalar_lea.sflag [#allocation4], %s1747_s26 }
 0x44f   : > { %p2155_p4 = pnand %p2160_p2, %p3836_p3 }
 0x451   : > { %2482 = dma.done.wait (!%p2155_p4), %s1748_s6, 4096  }
 0x452   : > { %2484 = vsyncadd (!%p2155_p4), %s1748_s6, 4294963200  ;;  %p16_p7 = scmp.ge.s32.totalorder %s2565_s24, 4   ;;  %s3837_s18 = smov %s2491_s19 }
 0x453   : > { %s3838_s19 = smov %s2495_s20  ;;  %s3839_s20 = smov %s2576_s27 }
 0x454   : > { %s3840_s21 = smov %s2565_s24  ;;  %18 = sbr.rel (!%p16_p7) target bundleno = 4 (0x4), region = 80 }
 0x45b   :  { %1753 = vsyncpa [#allocation3], 1 }
 0x45c   :  { %1755 = vsyncpa [#allocation3 + $0x1], 1 }
 0x45d   :  { %1756 = vsyncpa [#allocation4], 1 }
 0x45e   :  { %1758 = vsyncpa [#allocation4 + $0x1], 1 }

</bundles_post_ra>
